<compile_context>
chip_gen: v7x
topology: tpu7x:2x2x1
jax: 0.10.0
libtpu: 0.0.40
codegen_flags: <defaults>
</compile_context>

<pallas_src>
import jax
import jax.numpy as jnp
from jax import lax
from jax.experimental import pallas as pl
from jax.experimental.pallas import tpu as pltpu


# ----------------------------------------------------------------------------
# Fused bidirectional LSTM recurrence kernel (time-chunked)
# ----------------------------------------------------------------------------
def _bilstm_kernel(xf_ref, xb_ref, wh_ref, out_ref, h_sc, c_sc):
    """One time-chunk of the fused forward+backward LSTM recurrence.

    xf_ref : (Tc, B, 4H) bf16  fwd gate inputs for chunk c   (lanes [i f o g])
    xb_ref : (Tc, B, 4H) bf16  bwd gate inputs for the mirrored chunk
                               (index_map already picked chunk n-1-c)
    wh_ref : (2H, 8H)    bf16  block-diagonal recurrent weights, resident
    out_ref: (B, 4H)     f32   final states, lanes [h_f h_b c_f c_b]
    h_sc   : (B, 2H)     f32   VMEM scratch carry  [h_f | h_b]
    c_sc   : (B, 2H)     f32   VMEM scratch carry  [c_f | c_b]
    """
    chunk = pl.program_id(0)
    n_chunks = pl.num_programs(0)
    tc_len, _, h4 = xf_ref.shape
    hd = h4 // 4
    h2, h3 = 2 * hd, 3 * hd

    @pl.when(chunk == 0)
    def _():
        h_sc[...] = jnp.zeros_like(h_sc)
        c_sc[...] = jnp.zeros_like(c_sc)

    wh = wh_ref[...]                                   # bf16 (2H, 8H)

    def step(t, carry):
        hh, cf, cb = carry                             # (B,2H), (B,H), (B,H) f32
        # Single fused MXU matmul for both directions (K=2H, N=8H).
        mm = jnp.dot(hh.astype(jnp.bfloat16), wh,
                     preferred_element_type=jnp.float32)          # (B, 8H) f32
        # fwd inputs at local time t; bwd inputs at reversed local time.
        pre_f = xf_ref[t].astype(jnp.float32) + mm[:, :h4]        # (B, 4H)
        pre_b = xb_ref[tc_len - 1 - t].astype(jnp.float32) + mm[:, h4:]
        # Activations: sigmoid only on the i/f/o lanes, tanh only on g lanes.
        s_f = jax.nn.sigmoid(pre_f[:, :h3])
        g_f = jnp.tanh(pre_f[:, h3:])
        s_b = jax.nn.sigmoid(pre_b[:, :h3])
        g_b = jnp.tanh(pre_b[:, h3:])
        cf_new = s_f[:, hd:h2] * cf + s_f[:, :hd] * g_f
        cb_new = s_b[:, hd:h2] * cb + s_b[:, :hd] * g_b
        hf_new = s_f[:, h2:h3] * jnp.tanh(cf_new)
        hb_new = s_b[:, h2:h3] * jnp.tanh(cb_new)
        h_new = jnp.concatenate([hf_new, hb_new], axis=1)         # (B, 2H)
        return (h_new, cf_new, cb_new)

    h0 = h_sc[...]
    cf0 = c_sc[:, :hd]
    cb0 = c_sc[:, hd:]
    # Bounded unroll: keeps cross-step MXU/EUP/VPU overlap without vreg spills.
    h_fin, cf_fin, cb_fin = lax.fori_loop(0, tc_len, step, (h0, cf0, cb0),
                                          unroll=min(tc_len, 8))

    h_sc[...] = h_fin
    c_sc[...] = jnp.concatenate([cf_fin, cb_fin], axis=1)

    @pl.when(chunk == n_chunks - 1)
    def _():
        # Lane-dense (B, 4H) final store: [h_f h_b c_f c_b].
        out_ref[...] = jnp.concatenate([h_fin, cf_fin, cb_fin], axis=1)


# ----------------------------------------------------------------------------
# Parameter packing (one-time, plain JAX)
# ----------------------------------------------------------------------------
def pack_encoder_params(params):
    """Fold embedding + input projection + bias into a (V, 8H) bf16 lookup table
    (already in the kernel's final lane layout) and build the block-diagonal
    bf16 recurrent weight (2H, 8H)."""
    emb = params["embedding"].astype(jnp.float32)                 # (V, E)
    H = params["wh_fwd"].shape[0]                                 # python int

    def reorder(w):
        # torch gate column order [i f g o] -> kernel order [i f o g] (g last).
        lead = w.shape[:-1]
        w4 = w.reshape(lead + (4, H))
        w4 = jnp.take(w4, jnp.array([0, 1, 3, 2]), axis=-2)
        return w4.reshape(lead + (4 * H,))

    # Per-token gate-input tables, direction-major [fwd 4H | bwd 4H], bf16.
    ptab_f = reorder(emb @ params["wx_fwd"] + params["b_fwd"][None, :])
    ptab_b = reorder(emb @ params["wx_bwd"] + params["b_bwd"][None, :])
    ptab = jnp.concatenate([ptab_f, ptab_b], axis=1).astype(jnp.bfloat16)

    # Block-diagonal recurrent weight: fwd rows -> fwd gate columns, bwd rows ->
    # bwd gate columns (structural zeros elsewhere; fine at small H).
    wh_bd = jnp.zeros((2 * H, 8 * H), jnp.float32)
    wh_bd = wh_bd.at[:H, :4 * H].set(reorder(params["wh_fwd"]))
    wh_bd = wh_bd.at[H:, 4 * H:].set(reorder(params["wh_bwd"]))

    return {"ptab": ptab, "wh_bd": wh_bd.astype(jnp.bfloat16)}


def _pick_time_chunk(T, B, H):
    """Largest divisor of T such that double-buffered bf16 inputs for both
    directions stay well under v7x's 64 MiB VMEM (~24 MiB budget)."""
    budget = 24 << 20
    per_step = 2 * 2 * B * (4 * H) * 2          # 2 streams * 2 buffers * bf16
    tc = max(1, min(T, budget // per_step))
    while T % tc:
        tc -= 1
    return tc


# ----------------------------------------------------------------------------
# Encoder forward (glue in plain JAX, recurrence in Pallas)
# ----------------------------------------------------------------------------
def encoder_forward(source, packed):
    """source: (B, T) int32 token ids.  Returns (hidden, cell), each (2, B, H)."""
    ptab, wh_bd = packed["ptab"], packed["wh_bd"]
    B, T = source.shape
    H = wh_bd.shape[0] // 2                     # static (from array shape)
    H4, H8 = 4 * H, 8 * H

    # Single gather: embedding + x@Wx + b folded, final lane layout, bf16.
    xin = jnp.take(ptab, source.T.astype(jnp.int32), axis=0)     # (T, B, 8H) bf16

    Tc = _pick_time_chunk(T, B, H)
    n_chunks = T // Tc

    out = pl.pallas_call(
        _bilstm_kernel,
        out_shape=jax.ShapeDtypeStruct((B, H4), jnp.float32),
        grid=(n_chunks,),
        in_specs=[
            # fwd 4H lane-half of time chunk t
            pl.BlockSpec((Tc, B, H4), lambda t: (t, 0, 0)),
            # bwd 4H lane-half of the mirrored time chunk (reversal via index_map)
            pl.BlockSpec((Tc, B, H4), lambda t: (n_chunks - 1 - t, 0, 1)),
            # recurrent weights: same block every step -> stays VMEM-resident
            pl.BlockSpec((2 * H, H8), lambda t: (0, 0)),
        ],
        out_specs=pl.BlockSpec((B, H4), lambda t: (0, 0)),
        scratch_shapes=[pltpu.VMEM((B, 2 * H), jnp.float32),
                        pltpu.VMEM((B, 2 * H), jnp.float32)],
        compiler_params=pltpu.CompilerParams(
            dimension_semantics=("arbitrary",),
            vmem_limit_bytes=48 << 20),
    )(xin, xin, wh_bd)

    # Unpack to the PyTorch convention (num_layers*num_directions, B, H).
    hidden = out[:, :2 * H].reshape(B, 2, H).transpose(1, 0, 2)
    cell = out[:, 2 * H:].reshape(B, 2, H).transpose(1, 0, 2)
    return hidden, cell


# ----------------------------------------------------------------------------
# Pure-JAX reference (for correctness check only)
# ----------------------------------------------------------------------------
def _lstm_ref(x_tbe, wx, wh, b):
    T, B, _ = x_tbe.shape
    H = wh.shape[0]

    def step(carry, xt):
        h, c = carry
        gates = xt @ wx + h @ wh + b.reshape(1, -1)
        i = jax.nn.sigmoid(gates[:, 0 * H:1 * H])
        f = jax.nn.sigmoid(gates[:, 1 * H:2 * H])
        g = jnp.tanh(gates[:, 2 * H:3 * H])
        o = jax.nn.sigmoid(gates[:, 3 * H:4 * H])
        c = f * c + i * g
        h = o * jnp.tanh(c)
        return (h, c), None

    (h, c), _ = lax.scan(step, (jnp.zeros((B, H)), jnp.zeros((B, H))), x_tbe)
    return h, c


def encoder_forward_ref(source, params):
    emb = params["embedding"]
    embedded = jnp.take(emb, source, axis=0)          # (B, T, E)
    x_tbe = jnp.transpose(embedded, (1, 0, 2))
    hf, cf = _lstm_ref(x_tbe, params["wx_fwd"], params["wh_fwd"], params["b_fwd"])
    hb, cb = _lstm_ref(x_tbe[::-1], params["wx_bwd"], params["wh_bwd"], params["b_bwd"])
    return jnp.stack([hf, hb]), jnp.stack([cf, cb])


# ----------------------------------------------------------------------------
if __name__ == "__main__":
    # Module configuration (small, consistent with the nn.Module):
    chars = " abcdefghijklmnopqrstuvwxyz"
    char2id = {c: i for i, c in enumerate(chars)}
    input_dim = len(chars)            # number of phonemes / vocab
    emb_dim = 32
    hidden_dim = 32
    pad_idx = char2id[' ']
    B, T = 2, 8

    key = jax.random.PRNGKey(0)
    k_emb, k_w, k_src = jax.random.split(key, 3)
    kwf1, kwf2, kbf1, kbf2, kwb1, kwb2, kbb1, kbb2 = jax.random.split(k_w, 8)

    kscale = 1.0 / jnp.sqrt(hidden_dim)

    def unif(k, shape):
        return jax.random.uniform(k, shape, jnp.float32, -kscale, kscale)

    emb_table = jax.random.normal(k_emb, (input_dim, emb_dim), jnp.float32)
    emb_table = emb_table.at[pad_idx].set(0.0)        # padding_idx row is zero

    params = {
        "embedding": emb_table,
        # stored pre-transposed: (E, 4H) / (H, 4H); bias = b_ih + b_hh folded;
        # gate column order [i, f, g, o] as in torch.nn.LSTM
        "wx_fwd": unif(kwf1, (emb_dim, 4 * hidden_dim)),
        "wh_fwd": unif(kwf2, (hidden_dim, 4 * hidden_dim)),
        "b_fwd": unif(kbf1, (4 * hidden_dim,)) + unif(kbf2, (4 * hidden_dim,)),
        "wx_bwd": unif(kwb1, (emb_dim, 4 * hidden_dim)),
        "wh_bwd": unif(kwb2, (hidden_dim, 4 * hidden_dim)),
        "b_bwd": unif(kbb1, (4 * hidden_dim,)) + unif(kbb2, (4 * hidden_dim,)),
    }

    source = jax.random.randint(k_src, (B, T), 0, input_dim, jnp.int32)

    packed = pack_encoder_params(params)              # one-time weight repack
    fwd = jax.jit(encoder_forward)
    hidden, cell = jax.block_until_ready(fwd(source, packed))

    hidden_ref, cell_ref = encoder_forward_ref(source, params)

    assert hidden.shape == (2, B, hidden_dim) and cell.shape == (2, B, hidden_dim)
    # Tolerance accounts for bf16 gate-input table + bf16 recurrent weights
    # (carries / accumulation stay f32).
    assert jnp.allclose(hidden, hidden_ref, atol=3e-2), "hidden mismatch"
    assert jnp.allclose(cell, cell_ref, atol=3e-2), "cell mismatch"

    print("KERNEL_OK")
</pallas_src>

<mosaic_0001>
module attributes {stable_mosaic.version = 11 : i64} {
  func.func @_bilstm_kernel(%arg0: i32, %arg1: memref<8x2x128xbf16, #tpu.memory_space<vmem>>, %arg2: memref<8x2x128xbf16, #tpu.memory_space<vmem>>, %arg3: memref<64x256xbf16, #tpu.memory_space<vmem>>, %arg4: memref<2x128xf32, #tpu.memory_space<vmem>>, %arg5: memref<2x64xf32, #tpu.memory_space<vmem>>, %arg6: memref<2x64xf32, #tpu.memory_space<vmem>>) attributes {dimension_semantics = [#tpu.dimension_semantics<arbitrary>], iteration_bounds = array<i64: 1>, scalar_prefetch = 0 : i64, scratch_operands = 2 : i64, tpu.core_type = #tpu.core_type<tc>, window_params = [{transform_indices = @transform_0, window_bounds = array<i64: 8, 2, 128>}, {transform_indices = @transform_1, window_bounds = array<i64: 8, 2, 128>}, {pipeline_mode = #tpu.pipeline_mode<synchronous>, transform_indices = @transform_2, window_bounds = array<i64: 64, 256>}, {pipeline_mode = #tpu.pipeline_mode<synchronous>, transform_indices = @transform_3, window_bounds = array<i64: 2, 128>}]} {
    %c0_i32 = arith.constant 0 : i32
    %0 = arith.cmpi eq, %arg0, %c0_i32 : i32
    %1 = arith.extui %0 : i1 to i32
    %c0_i32_0 = arith.constant 0 : i32
    %2 = arith.cmpi ne, %1, %c0_i32_0 : i32
    scf.if %2 {
      %cst_77 = arith.constant 0.000000e+00 : f32
      %397 = vector.broadcast %cst_77 : f32 to vector<2x64xf32>
      %c0_78 = arith.constant 0 : index
      %c0_79 = arith.constant 0 : index
      %398 = vector.load %arg5[%c0_78, %c0_79] : memref<2x64xf32, #tpu.memory_space<vmem>>, vector<2x64xf32>
      tpu.vector_store %arg5[%c0_78, %c0_79], %397 {strides = array<i32>} : memref<2x64xf32, #tpu.memory_space<vmem>>, vector<2x64xf32>,
      %cst_80 = arith.constant 0.000000e+00 : f32
      %399 = vector.broadcast %cst_80 : f32 to vector<2x64xf32>
      %c0_81 = arith.constant 0 : index
      %c0_82 = arith.constant 0 : index
      %400 = vector.load %arg6[%c0_81, %c0_82] : memref<2x64xf32, #tpu.memory_space<vmem>>, vector<2x64xf32>
      tpu.vector_store %arg6[%c0_81, %c0_82], %399 {strides = array<i32>} : memref<2x64xf32, #tpu.memory_space<vmem>>, vector<2x64xf32>,
    } else {
    }
    %c0 = arith.constant 0 : index
    %c0_1 = arith.constant 0 : index
    %3 = vector.load %arg3[%c0, %c0_1] : memref<64x256xbf16, #tpu.memory_space<vmem>>, vector<64x256xbf16>
    %c0_2 = arith.constant 0 : index
    %c0_3 = arith.constant 0 : index
    %4 = vector.load %arg5[%c0_2, %c0_3] : memref<2x64xf32, #tpu.memory_space<vmem>>, vector<2x64xf32>
    %c0_4 = arith.constant 0 : index
    %c0_5 = arith.constant 0 : index
    %5 = vector.load %arg6[%c0_4, %c0_5] : memref<2x64xf32, #tpu.memory_space<vmem>>, vector<2x32xf32>
    %c0_6 = arith.constant 0 : index
    %c32 = arith.constant 32 : index
    %6 = vector.load %arg6[%c0_6, %c32] : memref<2x64xf32, #tpu.memory_space<vmem>>, vector<2x32xf32>
    %c0_i32_7 = arith.constant 0 : i32
    %7 = arith.truncf %4 : vector<2x64xf32> to vector<2x64xbf16>
    %cst = arith.constant dense<0.000000e+00> : vector<2x256xf32>
    %8 = tpu.matmul %7, %3, %cst {dimension_numbers = #tpu.dot_dimension_numbers<[1], [0], [0], [1], [0, 0, 1, 1], [], []>} : vector<2x64xbf16>, vector<64x256xbf16>, vector<2x256xf32> -> vector<2x256xf32>
    %9 = arith.index_cast %c0_i32_7 : i32 to index
    %c0_8 = arith.constant 0 : index
    %c0_9 = arith.constant 0 : index
    %10 = vector.load %arg1[%9, %c0_8, %c0_9] : memref<8x2x128xbf16, #tpu.memory_space<vmem>>, vector<1x2x128xbf16>
    %11 = vector.shape_cast %10 : vector<1x2x128xbf16> to vector<2x128xbf16>
    %12 = arith.extf %11 : vector<2x128xbf16> to vector<2x128xf32>
    %13 = vector.extract_strided_slice %8 {offsets = [0, 0], sizes = [2, 128], strides = [1, 1]} : vector<2x256xf32> to vector<2x128xf32>
    %14 = arith.addf %12, %13 : vector<2x128xf32>
    %c7_i32 = arith.constant 7 : i32
    %15 = arith.subi %c7_i32, %c0_i32_7 : i32
    %16 = arith.index_cast %15 : i32 to index
    %c0_10 = arith.constant 0 : index
    %c0_11 = arith.constant 0 : index
    %17 = vector.load %arg2[%16, %c0_10, %c0_11] : memref<8x2x128xbf16, #tpu.memory_space<vmem>>, vector<1x2x128xbf16>
    %18 = vector.shape_cast %17 : vector<1x2x128xbf16> to vector<2x128xbf16>
    %19 = arith.extf %18 : vector<2x128xbf16> to vector<2x128xf32>
    %20 = vector.extract_strided_slice %8 {offsets = [0, 128], sizes = [2, 128], strides = [1, 1]} : vector<2x256xf32> to vector<2x128xf32>
    %21 = arith.addf %19, %20 : vector<2x128xf32>
    %22 = vector.extract_strided_slice %14 {offsets = [0, 0], sizes = [2, 96], strides = [1, 1]} : vector<2x128xf32> to vector<2x96xf32>
    %23 = arith.negf %22 : vector<2x96xf32>
    %24 = math.exp %23 : vector<2x96xf32>
    %cst_12 = arith.constant 1.000000e+00 : f32
    %25 = vector.broadcast %cst_12 : f32 to vector<2x96xf32>
    %26 = arith.addf %25, %24 : vector<2x96xf32>
    %27 = arith.divf %25, %26 : vector<2x96xf32>
    %28 = vector.extract_strided_slice %14 {offsets = [0, 96], sizes = [2, 32], strides = [1, 1]} : vector<2x128xf32> to vector<2x32xf32>
    %29 = math.tanh %28 : vector<2x32xf32>
    %30 = vector.extract_strided_slice %21 {offsets = [0, 0], sizes = [2, 96], strides = [1, 1]} : vector<2x128xf32> to vector<2x96xf32>
    %31 = arith.negf %30 : vector<2x96xf32>
    %32 = math.exp %31 : vector<2x96xf32>
    %cst_13 = arith.constant 1.000000e+00 : f32
    %33 = vector.broadcast %cst_13 : f32 to vector<2x96xf32>
    %34 = arith.addf %33, %32 : vector<2x96xf32>
    %35 = arith.divf %33, %34 : vector<2x96xf32>
    %36 = vector.extract_strided_slice %21 {offsets = [0, 96], sizes = [2, 32], strides = [1, 1]} : vector<2x128xf32> to vector<2x32xf32>
    %37 = math.tanh %36 : vector<2x32xf32>
    %38 = vector.extract_strided_slice %27 {offsets = [0, 32], sizes = [2, 32], strides = [1, 1]} : vector<2x96xf32> to vector<2x32xf32>
    %39 = arith.mulf %38, %5 : vector<2x32xf32>
    %40 = vector.extract_strided_slice %27 {offsets = [0, 0], sizes = [2, 32], strides = [1, 1]} : vector<2x96xf32> to vector<2x32xf32>
    %41 = arith.mulf %40, %29 : vector<2x32xf32>
    %42 = arith.addf %39, %41 : vector<2x32xf32>
    %43 = vector.extract_strided_slice %35 {offsets = [0, 32], sizes = [2, 32], strides = [1, 1]} : vector<2x96xf32> to vector<2x32xf32>
    %44 = arith.mulf %43, %6 : vector<2x32xf32>
    %45 = vector.extract_strided_slice %35 {offsets = [0, 0], sizes = [2, 32], strides = [1, 1]} : vector<2x96xf32> to vector<2x32xf32>
    %46 = arith.mulf %45, %37 : vector<2x32xf32>
    %47 = arith.addf %44, %46 : vector<2x32xf32>
    %48 = vector.extract_strided_slice %27 {offsets = [0, 64], sizes = [2, 32], strides = [1, 1]} : vector<2x96xf32> to vector<2x32xf32>
    %49 = math.tanh %42 : vector<2x32xf32>
    %50 = arith.mulf %48, %49 : vector<2x32xf32>
    %51 = vector.extract_strided_slice %35 {offsets = [0, 64], sizes = [2, 32], strides = [1, 1]} : vector<2x96xf32> to vector<2x32xf32>
    %52 = math.tanh %47 : vector<2x32xf32>
    %53 = arith.mulf %51, %52 : vector<2x32xf32>
    %54 = tpu.concatenate %50, %53 in 1 : vector<2x32xf32>, vector<2x32xf32> -> vector<2x64xf32>
    %c1_i32 = arith.constant 1 : i32
    %55 = arith.truncf %54 : vector<2x64xf32> to vector<2x64xbf16>
    %cst_14 = arith.constant dense<0.000000e+00> : vector<2x256xf32>
    %56 = tpu.matmul %55, %3, %cst_14 {dimension_numbers = #tpu.dot_dimension_numbers<[1], [0], [0], [1], [0, 0, 1, 1], [], []>} : vector<2x64xbf16>, vector<64x256xbf16>, vector<2x256xf32> -> vector<2x256xf32>
    %57 = arith.index_cast %c1_i32 : i32 to index
    %c0_15 = arith.constant 0 : index
    %c0_16 = arith.constant 0 : index
    %58 = vector.load %arg1[%57, %c0_15, %c0_16] : memref<8x2x128xbf16, #tpu.memory_space<vmem>>, vector<1x2x128xbf16>
    %59 = vector.shape_cast %58 : vector<1x2x128xbf16> to vector<2x128xbf16>
    %60 = arith.extf %59 : vector<2x128xbf16> to vector<2x128xf32>
    %61 = vector.extract_strided_slice %56 {offsets = [0, 0], sizes = [2, 128], strides = [1, 1]} : vector<2x256xf32> to vector<2x128xf32>
    %62 = arith.addf %60, %61 : vector<2x128xf32>
    %c7_i32_17 = arith.constant 7 : i32
    %63 = arith.subi %c7_i32_17, %c1_i32 : i32
    %64 = arith.index_cast %63 : i32 to index
    %c0_18 = arith.constant 0 : index
    %c0_19 = arith.constant 0 : index
    %65 = vector.load %arg2[%64, %c0_18, %c0_19] : memref<8x2x128xbf16, #tpu.memory_space<vmem>>, vector<1x2x128xbf16>
    %66 = vector.shape_cast %65 : vector<1x2x128xbf16> to vector<2x128xbf16>
    %67 = arith.extf %66 : vector<2x128xbf16> to vector<2x128xf32>
    %68 = vector.extract_strided_slice %56 {offsets = [0, 128], sizes = [2, 128], strides = [1, 1]} : vector<2x256xf32> to vector<2x128xf32>
    %69 = arith.addf %67, %68 : vector<2x128xf32>
    %70 = vector.extract_strided_slice %62 {offsets = [0, 0], sizes = [2, 96], strides = [1, 1]} : vector<2x128xf32> to vector<2x96xf32>
    %71 = arith.negf %70 : vector<2x96xf32>
    %72 = math.exp %71 : vector<2x96xf32>
    %cst_20 = arith.constant 1.000000e+00 : f32
    %73 = vector.broadcast %cst_20 : f32 to vector<2x96xf32>
    %74 = arith.addf %73, %72 : vector<2x96xf32>
    %75 = arith.divf %73, %74 : vector<2x96xf32>
    %76 = vector.extract_strided_slice %62 {offsets = [0, 96], sizes = [2, 32], strides = [1, 1]} : vector<2x128xf32> to vector<2x32xf32>
    %77 = math.tanh %76 : vector<2x32xf32>
    %78 = vector.extract_strided_slice %69 {offsets = [0, 0], sizes = [2, 96], strides = [1, 1]} : vector<2x128xf32> to vector<2x96xf32>
    %79 = arith.negf %78 : vector<2x96xf32>
    %80 = math.exp %79 : vector<2x96xf32>
    %cst_21 = arith.constant 1.000000e+00 : f32
    %81 = vector.broadcast %cst_21 : f32 to vector<2x96xf32>
    %82 = arith.addf %81, %80 : vector<2x96xf32>
    %83 = arith.divf %81, %82 : vector<2x96xf32>
    %84 = vector.extract_strided_slice %69 {offsets = [0, 96], sizes = [2, 32], strides = [1, 1]} : vector<2x128xf32> to vector<2x32xf32>
    %85 = math.tanh %84 : vector<2x32xf32>
    %86 = vector.extract_strided_slice %75 {offsets = [0, 32], sizes = [2, 32], strides = [1, 1]} : vector<2x96xf32> to vector<2x32xf32>
    %87 = arith.mulf %86, %42 : vector<2x32xf32>
    %88 = vector.extract_strided_slice %75 {offsets = [0, 0], sizes = [2, 32], strides = [1, 1]} : vector<2x96xf32> to vector<2x32xf32>
    %89 = arith.mulf %88, %77 : vector<2x32xf32>
    %90 = arith.addf %87, %89 : vector<2x32xf32>
    %91 = vector.extract_strided_slice %83 {offsets = [0, 32], sizes = [2, 32], strides = [1, 1]} : vector<2x96xf32> to vector<2x32xf32>
    %92 = arith.mulf %91, %47 : vector<2x32xf32>
    %93 = vector.extract_strided_slice %83 {offsets = [0, 0], sizes = [2, 32], strides = [1, 1]} : vector<2x96xf32> to vector<2x32xf32>
    %94 = arith.mulf %93, %85 : vector<2x32xf32>
    %95 = arith.addf %92, %94 : vector<2x32xf32>
    %96 = vector.extract_strided_slice %75 {offsets = [0, 64], sizes = [2, 32], strides = [1, 1]} : vector<2x96xf32> to vector<2x32xf32>
    %97 = math.tanh %90 : vector<2x32xf32>
    %98 = arith.mulf %96, %97 : vector<2x32xf32>
    %99 = vector.extract_strided_slice %83 {offsets = [0, 64], sizes = [2, 32], strides = [1, 1]} : vector<2x96xf32> to vector<2x32xf32>
    %100 = math.tanh %95 : vector<2x32xf32>
    %101 = arith.mulf %99, %100 : vector<2x32xf32>
    %102 = tpu.concatenate %98, %101 in 1 : vector<2x32xf32>, vector<2x32xf32> -> vector<2x64xf32>
    %c2_i32 = arith.constant 2 : i32
    %103 = arith.truncf %102 : vector<2x64xf32> to vector<2x64xbf16>
    %cst_22 = arith.constant dense<0.000000e+00> : vector<2x256xf32>
    %104 = tpu.matmul %103, %3, %cst_22 {dimension_numbers = #tpu.dot_dimension_numbers<[1], [0], [0], [1], [0, 0, 1, 1], [], []>} : vector<2x64xbf16>, vector<64x256xbf16>, vector<2x256xf32> -> vector<2x256xf32>
    %105 = arith.index_cast %c2_i32 : i32 to index
    %c0_23 = arith.constant 0 : index
    %c0_24 = arith.constant 0 : index
    %106 = vector.load %arg1[%105, %c0_23, %c0_24] : memref<8x2x128xbf16, #tpu.memory_space<vmem>>, vector<1x2x128xbf16>
    %107 = vector.shape_cast %106 : vector<1x2x128xbf16> to vector<2x128xbf16>
    %108 = arith.extf %107 : vector<2x128xbf16> to vector<2x128xf32>
    %109 = vector.extract_strided_slice %104 {offsets = [0, 0], sizes = [2, 128], strides = [1, 1]} : vector<2x256xf32> to vector<2x128xf32>
    %110 = arith.addf %108, %109 : vector<2x128xf32>
    %c7_i32_25 = arith.constant 7 : i32
    %111 = arith.subi %c7_i32_25, %c2_i32 : i32
    %112 = arith.index_cast %111 : i32 to index
    %c0_26 = arith.constant 0 : index
    %c0_27 = arith.constant 0 : index
    %113 = vector.load %arg2[%112, %c0_26, %c0_27] : memref<8x2x128xbf16, #tpu.memory_space<vmem>>, vector<1x2x128xbf16>
    %114 = vector.shape_cast %113 : vector<1x2x128xbf16> to vector<2x128xbf16>
    %115 = arith.extf %114 : vector<2x128xbf16> to vector<2x128xf32>
    %116 = vector.extract_strided_slice %104 {offsets = [0, 128], sizes = [2, 128], strides = [1, 1]} : vector<2x256xf32> to vector<2x128xf32>
    %117 = arith.addf %115, %116 : vector<2x128xf32>
    %118 = vector.extract_strided_slice %110 {offsets = [0, 0], sizes = [2, 96], strides = [1, 1]} : vector<2x128xf32> to vector<2x96xf32>
    %119 = arith.negf %118 : vector<2x96xf32>
    %120 = math.exp %119 : vector<2x96xf32>
    %cst_28 = arith.constant 1.000000e+00 : f32
    %121 = vector.broadcast %cst_28 : f32 to vector<2x96xf32>
    %122 = arith.addf %121, %120 : vector<2x96xf32>
    %123 = arith.divf %121, %122 : vector<2x96xf32>
    %124 = vector.extract_strided_slice %110 {offsets = [0, 96], sizes = [2, 32], strides = [1, 1]} : vector<2x128xf32> to vector<2x32xf32>
    %125 = math.tanh %124 : vector<2x32xf32>
    %126 = vector.extract_strided_slice %117 {offsets = [0, 0], sizes = [2, 96], strides = [1, 1]} : vector<2x128xf32> to vector<2x96xf32>
    %127 = arith.negf %126 : vector<2x96xf32>
    %128 = math.exp %127 : vector<2x96xf32>
    %cst_29 = arith.constant 1.000000e+00 : f32
    %129 = vector.broadcast %cst_29 : f32 to vector<2x96xf32>
    %130 = arith.addf %129, %128 : vector<2x96xf32>
    %131 = arith.divf %129, %130 : vector<2x96xf32>
    %132 = vector.extract_strided_slice %117 {offsets = [0, 96], sizes = [2, 32], strides = [1, 1]} : vector<2x128xf32> to vector<2x32xf32>
    %133 = math.tanh %132 : vector<2x32xf32>
    %134 = vector.extract_strided_slice %123 {offsets = [0, 32], sizes = [2, 32], strides = [1, 1]} : vector<2x96xf32> to vector<2x32xf32>
    %135 = arith.mulf %134, %90 : vector<2x32xf32>
    %136 = vector.extract_strided_slice %123 {offsets = [0, 0], sizes = [2, 32], strides = [1, 1]} : vector<2x96xf32> to vector<2x32xf32>
    %137 = arith.mulf %136, %125 : vector<2x32xf32>
    %138 = arith.addf %135, %137 : vector<2x32xf32>
    %139 = vector.extract_strided_slice %131 {offsets = [0, 32], sizes = [2, 32], strides = [1, 1]} : vector<2x96xf32> to vector<2x32xf32>
    %140 = arith.mulf %139, %95 : vector<2x32xf32>
    %141 = vector.extract_strided_slice %131 {offsets = [0, 0], sizes = [2, 32], strides = [1, 1]} : vector<2x96xf32> to vector<2x32xf32>
    %142 = arith.mulf %141, %133 : vector<2x32xf32>
    %143 = arith.addf %140, %142 : vector<2x32xf32>
    %144 = vector.extract_strided_slice %123 {offsets = [0, 64], sizes = [2, 32], strides = [1, 1]} : vector<2x96xf32> to vector<2x32xf32>
    %145 = math.tanh %138 : vector<2x32xf32>
    %146 = arith.mulf %144, %145 : vector<2x32xf32>
    %147 = vector.extract_strided_slice %131 {offsets = [0, 64], sizes = [2, 32], strides = [1, 1]} : vector<2x96xf32> to vector<2x32xf32>
    %148 = math.tanh %143 : vector<2x32xf32>
    %149 = arith.mulf %147, %148 : vector<2x32xf32>
    %150 = tpu.concatenate %146, %149 in 1 : vector<2x32xf32>, vector<2x32xf32> -> vector<2x64xf32>
    %c3_i32 = arith.constant 3 : i32
    %151 = arith.truncf %150 : vector<2x64xf32> to vector<2x64xbf16>
    %cst_30 = arith.constant dense<0.000000e+00> : vector<2x256xf32>
    %152 = tpu.matmul %151, %3, %cst_30 {dimension_numbers = #tpu.dot_dimension_numbers<[1], [0], [0], [1], [0, 0, 1, 1], [], []>} : vector<2x64xbf16>, vector<64x256xbf16>, vector<2x256xf32> -> vector<2x256xf32>
    %153 = arith.index_cast %c3_i32 : i32 to index
    %c0_31 = arith.constant 0 : index
    %c0_32 = arith.constant 0 : index
    %154 = vector.load %arg1[%153, %c0_31, %c0_32] : memref<8x2x128xbf16, #tpu.memory_space<vmem>>, vector<1x2x128xbf16>
    %155 = vector.shape_cast %154 : vector<1x2x128xbf16> to vector<2x128xbf16>
    %156 = arith.extf %155 : vector<2x128xbf16> to vector<2x128xf32>
    %157 = vector.extract_strided_slice %152 {offsets = [0, 0], sizes = [2, 128], strides = [1, 1]} : vector<2x256xf32> to vector<2x128xf32>
    %158 = arith.addf %156, %157 : vector<2x128xf32>
    %c7_i32_33 = arith.constant 7 : i32
    %159 = arith.subi %c7_i32_33, %c3_i32 : i32
    %160 = arith.index_cast %159 : i32 to index
    %c0_34 = arith.constant 0 : index
    %c0_35 = arith.constant 0 : index
    %161 = vector.load %arg2[%160, %c0_34, %c0_35] : memref<8x2x128xbf16, #tpu.memory_space<vmem>>, vector<1x2x128xbf16>
    %162 = vector.shape_cast %161 : vector<1x2x128xbf16> to vector<2x128xbf16>
    %163 = arith.extf %162 : vector<2x128xbf16> to vector<2x128xf32>
    %164 = vector.extract_strided_slice %152 {offsets = [0, 128], sizes = [2, 128], strides = [1, 1]} : vector<2x256xf32> to vector<2x128xf32>
    %165 = arith.addf %163, %164 : vector<2x128xf32>
    %166 = vector.extract_strided_slice %158 {offsets = [0, 0], sizes = [2, 96], strides = [1, 1]} : vector<2x128xf32> to vector<2x96xf32>
    %167 = arith.negf %166 : vector<2x96xf32>
    %168 = math.exp %167 : vector<2x96xf32>
    %cst_36 = arith.constant 1.000000e+00 : f32
    %169 = vector.broadcast %cst_36 : f32 to vector<2x96xf32>
    %170 = arith.addf %169, %168 : vector<2x96xf32>
    %171 = arith.divf %169, %170 : vector<2x96xf32>
    %172 = vector.extract_strided_slice %158 {offsets = [0, 96], sizes = [2, 32], strides = [1, 1]} : vector<2x128xf32> to vector<2x32xf32>
    %173 = math.tanh %172 : vector<2x32xf32>
    %174 = vector.extract_strided_slice %165 {offsets = [0, 0], sizes = [2, 96], strides = [1, 1]} : vector<2x128xf32> to vector<2x96xf32>
    %175 = arith.negf %174 : vector<2x96xf32>
    %176 = math.exp %175 : vector<2x96xf32>
    %cst_37 = arith.constant 1.000000e+00 : f32
    %177 = vector.broadcast %cst_37 : f32 to vector<2x96xf32>
    %178 = arith.addf %177, %176 : vector<2x96xf32>
    %179 = arith.divf %177, %178 : vector<2x96xf32>
    %180 = vector.extract_strided_slice %165 {offsets = [0, 96], sizes = [2, 32], strides = [1, 1]} : vector<2x128xf32> to vector<2x32xf32>
    %181 = math.tanh %180 : vector<2x32xf32>
    %182 = vector.extract_strided_slice %171 {offsets = [0, 32], sizes = [2, 32], strides = [1, 1]} : vector<2x96xf32> to vector<2x32xf32>
    %183 = arith.mulf %182, %138 : vector<2x32xf32>
    %184 = vector.extract_strided_slice %171 {offsets = [0, 0], sizes = [2, 32], strides = [1, 1]} : vector<2x96xf32> to vector<2x32xf32>
    %185 = arith.mulf %184, %173 : vector<2x32xf32>
    %186 = arith.addf %183, %185 : vector<2x32xf32>
    %187 = vector.extract_strided_slice %179 {offsets = [0, 32], sizes = [2, 32], strides = [1, 1]} : vector<2x96xf32> to vector<2x32xf32>
    %188 = arith.mulf %187, %143 : vector<2x32xf32>
    %189 = vector.extract_strided_slice %179 {offsets = [0, 0], sizes = [2, 32], strides = [1, 1]} : vector<2x96xf32> to vector<2x32xf32>
    %190 = arith.mulf %189, %181 : vector<2x32xf32>
    %191 = arith.addf %188, %190 : vector<2x32xf32>
    %192 = vector.extract_strided_slice %171 {offsets = [0, 64], sizes = [2, 32], strides = [1, 1]} : vector<2x96xf32> to vector<2x32xf32>
    %193 = math.tanh %186 : vector<2x32xf32>
    %194 = arith.mulf %192, %193 : vector<2x32xf32>
    %195 = vector.extract_strided_slice %179 {offsets = [0, 64], sizes = [2, 32], strides = [1, 1]} : vector<2x96xf32> to vector<2x32xf32>
    %196 = math.tanh %191 : vector<2x32xf32>
    %197 = arith.mulf %195, %196 : vector<2x32xf32>
    %198 = tpu.concatenate %194, %197 in 1 : vector<2x32xf32>, vector<2x32xf32> -> vector<2x64xf32>
    %c4_i32 = arith.constant 4 : i32
    %199 = arith.truncf %198 : vector<2x64xf32> to vector<2x64xbf16>
    %cst_38 = arith.constant dense<0.000000e+00> : vector<2x256xf32>
    %200 = tpu.matmul %199, %3, %cst_38 {dimension_numbers = #tpu.dot_dimension_numbers<[1], [0], [0], [1], [0, 0, 1, 1], [], []>} : vector<2x64xbf16>, vector<64x256xbf16>, vector<2x256xf32> -> vector<2x256xf32>
    %201 = arith.index_cast %c4_i32 : i32 to index
    %c0_39 = arith.constant 0 : index
    %c0_40 = arith.constant 0 : index
    %202 = vector.load %arg1[%201, %c0_39, %c0_40] : memref<8x2x128xbf16, #tpu.memory_space<vmem>>, vector<1x2x128xbf16>
    %203 = vector.shape_cast %202 : vector<1x2x128xbf16> to vector<2x128xbf16>
    %204 = arith.extf %203 : vector<2x128xbf16> to vector<2x128xf32>
    %205 = vector.extract_strided_slice %200 {offsets = [0, 0], sizes = [2, 128], strides = [1, 1]} : vector<2x256xf32> to vector<2x128xf32>
    %206 = arith.addf %204, %205 : vector<2x128xf32>
    %c7_i32_41 = arith.constant 7 : i32
    %207 = arith.subi %c7_i32_41, %c4_i32 : i32
    %208 = arith.index_cast %207 : i32 to index
    %c0_42 = arith.constant 0 : index
    %c0_43 = arith.constant 0 : index
    %209 = vector.load %arg2[%208, %c0_42, %c0_43] : memref<8x2x128xbf16, #tpu.memory_space<vmem>>, vector<1x2x128xbf16>
    %210 = vector.shape_cast %209 : vector<1x2x128xbf16> to vector<2x128xbf16>
    %211 = arith.extf %210 : vector<2x128xbf16> to vector<2x128xf32>
    %212 = vector.extract_strided_slice %200 {offsets = [0, 128], sizes = [2, 128], strides = [1, 1]} : vector<2x256xf32> to vector<2x128xf32>
    %213 = arith.addf %211, %212 : vector<2x128xf32>
    %214 = vector.extract_strided_slice %206 {offsets = [0, 0], sizes = [2, 96], strides = [1, 1]} : vector<2x128xf32> to vector<2x96xf32>
    %215 = arith.negf %214 : vector<2x96xf32>
    %216 = math.exp %215 : vector<2x96xf32>
    %cst_44 = arith.constant 1.000000e+00 : f32
    %217 = vector.broadcast %cst_44 : f32 to vector<2x96xf32>
    %218 = arith.addf %217, %216 : vector<2x96xf32>
    %219 = arith.divf %217, %218 : vector<2x96xf32>
    %220 = vector.extract_strided_slice %206 {offsets = [0, 96], sizes = [2, 32], strides = [1, 1]} : vector<2x128xf32> to vector<2x32xf32>
    %221 = math.tanh %220 : vector<2x32xf32>
    %222 = vector.extract_strided_slice %213 {offsets = [0, 0], sizes = [2, 96], strides = [1, 1]} : vector<2x128xf32> to vector<2x96xf32>
    %223 = arith.negf %222 : vector<2x96xf32>
    %224 = math.exp %223 : vector<2x96xf32>
    %cst_45 = arith.constant 1.000000e+00 : f32
    %225 = vector.broadcast %cst_45 : f32 to vector<2x96xf32>
    %226 = arith.addf %225, %224 : vector<2x96xf32>
    %227 = arith.divf %225, %226 : vector<2x96xf32>
    %228 = vector.extract_strided_slice %213 {offsets = [0, 96], sizes = [2, 32], strides = [1, 1]} : vector<2x128xf32> to vector<2x32xf32>
    %229 = math.tanh %228 : vector<2x32xf32>
    %230 = vector.extract_strided_slice %219 {offsets = [0, 32], sizes = [2, 32], strides = [1, 1]} : vector<2x96xf32> to vector<2x32xf32>
    %231 = arith.mulf %230, %186 : vector<2x32xf32>
    %232 = vector.extract_strided_slice %219 {offsets = [0, 0], sizes = [2, 32], strides = [1, 1]} : vector<2x96xf32> to vector<2x32xf32>
    %233 = arith.mulf %232, %221 : vector<2x32xf32>
    %234 = arith.addf %231, %233 : vector<2x32xf32>
    %235 = vector.extract_strided_slice %227 {offsets = [0, 32], sizes = [2, 32], strides = [1, 1]} : vector<2x96xf32> to vector<2x32xf32>
    %236 = arith.mulf %235, %191 : vector<2x32xf32>
    %237 = vector.extract_strided_slice %227 {offsets = [0, 0], sizes = [2, 32], strides = [1, 1]} : vector<2x96xf32> to vector<2x32xf32>
    %238 = arith.mulf %237, %229 : vector<2x32xf32>
    %239 = arith.addf %236, %238 : vector<2x32xf32>
    %240 = vector.extract_strided_slice %219 {offsets = [0, 64], sizes = [2, 32], strides = [1, 1]} : vector<2x96xf32> to vector<2x32xf32>
    %241 = math.tanh %234 : vector<2x32xf32>
    %242 = arith.mulf %240, %241 : vector<2x32xf32>
    %243 = vector.extract_strided_slice %227 {offsets = [0, 64], sizes = [2, 32], strides = [1, 1]} : vector<2x96xf32> to vector<2x32xf32>
    %244 = math.tanh %239 : vector<2x32xf32>
    %245 = arith.mulf %243, %244 : vector<2x32xf32>
    %246 = tpu.concatenate %242, %245 in 1 : vector<2x32xf32>, vector<2x32xf32> -> vector<2x64xf32>
    %c5_i32 = arith.constant 5 : i32
    %247 = arith.truncf %246 : vector<2x64xf32> to vector<2x64xbf16>
    %cst_46 = arith.constant dense<0.000000e+00> : vector<2x256xf32>
    %248 = tpu.matmul %247, %3, %cst_46 {dimension_numbers = #tpu.dot_dimension_numbers<[1], [0], [0], [1], [0, 0, 1, 1], [], []>} : vector<2x64xbf16>, vector<64x256xbf16>, vector<2x256xf32> -> vector<2x256xf32>
    %249 = arith.index_cast %c5_i32 : i32 to index
    %c0_47 = arith.constant 0 : index
    %c0_48 = arith.constant 0 : index
    %250 = vector.load %arg1[%249, %c0_47, %c0_48] : memref<8x2x128xbf16, #tpu.memory_space<vmem>>, vector<1x2x128xbf16>
    %251 = vector.shape_cast %250 : vector<1x2x128xbf16> to vector<2x128xbf16>
    %252 = arith.extf %251 : vector<2x128xbf16> to vector<2x128xf32>
    %253 = vector.extract_strided_slice %248 {offsets = [0, 0], sizes = [2, 128], strides = [1, 1]} : vector<2x256xf32> to vector<2x128xf32>
    %254 = arith.addf %252, %253 : vector<2x128xf32>
    %c7_i32_49 = arith.constant 7 : i32
    %255 = arith.subi %c7_i32_49, %c5_i32 : i32
    %256 = arith.index_cast %255 : i32 to index
    %c0_50 = arith.constant 0 : index
    %c0_51 = arith.constant 0 : index
    %257 = vector.load %arg2[%256, %c0_50, %c0_51] : memref<8x2x128xbf16, #tpu.memory_space<vmem>>, vector<1x2x128xbf16>
    %258 = vector.shape_cast %257 : vector<1x2x128xbf16> to vector<2x128xbf16>
    %259 = arith.extf %258 : vector<2x128xbf16> to vector<2x128xf32>
    %260 = vector.extract_strided_slice %248 {offsets = [0, 128], sizes = [2, 128], strides = [1, 1]} : vector<2x256xf32> to vector<2x128xf32>
    %261 = arith.addf %259, %260 : vector<2x128xf32>
    %262 = vector.extract_strided_slice %254 {offsets = [0, 0], sizes = [2, 96], strides = [1, 1]} : vector<2x128xf32> to vector<2x96xf32>
    %263 = arith.negf %262 : vector<2x96xf32>
    %264 = math.exp %263 : vector<2x96xf32>
    %cst_52 = arith.constant 1.000000e+00 : f32
    %265 = vector.broadcast %cst_52 : f32 to vector<2x96xf32>
    %266 = arith.addf %265, %264 : vector<2x96xf32>
    %267 = arith.divf %265, %266 : vector<2x96xf32>
    %268 = vector.extract_strided_slice %254 {offsets = [0, 96], sizes = [2, 32], strides = [1, 1]} : vector<2x128xf32> to vector<2x32xf32>
    %269 = math.tanh %268 : vector<2x32xf32>
    %270 = vector.extract_strided_slice %261 {offsets = [0, 0], sizes = [2, 96], strides = [1, 1]} : vector<2x128xf32> to vector<2x96xf32>
    %271 = arith.negf %270 : vector<2x96xf32>
    %272 = math.exp %271 : vector<2x96xf32>
    %cst_53 = arith.constant 1.000000e+00 : f32
    %273 = vector.broadcast %cst_53 : f32 to vector<2x96xf32>
    %274 = arith.addf %273, %272 : vector<2x96xf32>
    %275 = arith.divf %273, %274 : vector<2x96xf32>
    %276 = vector.extract_strided_slice %261 {offsets = [0, 96], sizes = [2, 32], strides = [1, 1]} : vector<2x128xf32> to vector<2x32xf32>
    %277 = math.tanh %276 : vector<2x32xf32>
    %278 = vector.extract_strided_slice %267 {offsets = [0, 32], sizes = [2, 32], strides = [1, 1]} : vector<2x96xf32> to vector<2x32xf32>
    %279 = arith.mulf %278, %234 : vector<2x32xf32>
    %280 = vector.extract_strided_slice %267 {offsets = [0, 0], sizes = [2, 32], strides = [1, 1]} : vector<2x96xf32> to vector<2x32xf32>
    %281 = arith.mulf %280, %269 : vector<2x32xf32>
    %282 = arith.addf %279, %281 : vector<2x32xf32>
    %283 = vector.extract_strided_slice %275 {offsets = [0, 32], sizes = [2, 32], strides = [1, 1]} : vector<2x96xf32> to vector<2x32xf32>
    %284 = arith.mulf %283, %239 : vector<2x32xf32>
    %285 = vector.extract_strided_slice %275 {offsets = [0, 0], sizes = [2, 32], strides = [1, 1]} : vector<2x96xf32> to vector<2x32xf32>
    %286 = arith.mulf %285, %277 : vector<2x32xf32>
    %287 = arith.addf %284, %286 : vector<2x32xf32>
    %288 = vector.extract_strided_slice %267 {offsets = [0, 64], sizes = [2, 32], strides = [1, 1]} : vector<2x96xf32> to vector<2x32xf32>
    %289 = math.tanh %282 : vector<2x32xf32>
    %290 = arith.mulf %288, %289 : vector<2x32xf32>
    %291 = vector.extract_strided_slice %275 {offsets = [0, 64], sizes = [2, 32], strides = [1, 1]} : vector<2x96xf32> to vector<2x32xf32>
    %292 = math.tanh %287 : vector<2x32xf32>
    %293 = arith.mulf %291, %292 : vector<2x32xf32>
    %294 = tpu.concatenate %290, %293 in 1 : vector<2x32xf32>, vector<2x32xf32> -> vector<2x64xf32>
    %c6_i32 = arith.constant 6 : i32
    %295 = arith.truncf %294 : vector<2x64xf32> to vector<2x64xbf16>
    %cst_54 = arith.constant dense<0.000000e+00> : vector<2x256xf32>
    %296 = tpu.matmul %295, %3, %cst_54 {dimension_numbers = #tpu.dot_dimension_numbers<[1], [0], [0], [1], [0, 0, 1, 1], [], []>} : vector<2x64xbf16>, vector<64x256xbf16>, vector<2x256xf32> -> vector<2x256xf32>
    %297 = arith.index_cast %c6_i32 : i32 to index
    %c0_55 = arith.constant 0 : index
    %c0_56 = arith.constant 0 : index
    %298 = vector.load %arg1[%297, %c0_55, %c0_56] : memref<8x2x128xbf16, #tpu.memory_space<vmem>>, vector<1x2x128xbf16>
    %299 = vector.shape_cast %298 : vector<1x2x128xbf16> to vector<2x128xbf16>
    %300 = arith.extf %299 : vector<2x128xbf16> to vector<2x128xf32>
    %301 = vector.extract_strided_slice %296 {offsets = [0, 0], sizes = [2, 128], strides = [1, 1]} : vector<2x256xf32> to vector<2x128xf32>
    %302 = arith.addf %300, %301 : vector<2x128xf32>
    %c7_i32_57 = arith.constant 7 : i32
    %303 = arith.subi %c7_i32_57, %c6_i32 : i32
    %304 = arith.index_cast %303 : i32 to index
    %c0_58 = arith.constant 0 : index
    %c0_59 = arith.constant 0 : index
    %305 = vector.load %arg2[%304, %c0_58, %c0_59] : memref<8x2x128xbf16, #tpu.memory_space<vmem>>, vector<1x2x128xbf16>
    %306 = vector.shape_cast %305 : vector<1x2x128xbf16> to vector<2x128xbf16>
    %307 = arith.extf %306 : vector<2x128xbf16> to vector<2x128xf32>
    %308 = vector.extract_strided_slice %296 {offsets = [0, 128], sizes = [2, 128], strides = [1, 1]} : vector<2x256xf32> to vector<2x128xf32>
    %309 = arith.addf %307, %308 : vector<2x128xf32>
    %310 = vector.extract_strided_slice %302 {offsets = [0, 0], sizes = [2, 96], strides = [1, 1]} : vector<2x128xf32> to vector<2x96xf32>
    %311 = arith.negf %310 : vector<2x96xf32>
    %312 = math.exp %311 : vector<2x96xf32>
    %cst_60 = arith.constant 1.000000e+00 : f32
    %313 = vector.broadcast %cst_60 : f32 to vector<2x96xf32>
    %314 = arith.addf %313, %312 : vector<2x96xf32>
    %315 = arith.divf %313, %314 : vector<2x96xf32>
    %316 = vector.extract_strided_slice %302 {offsets = [0, 96], sizes = [2, 32], strides = [1, 1]} : vector<2x128xf32> to vector<2x32xf32>
    %317 = math.tanh %316 : vector<2x32xf32>
    %318 = vector.extract_strided_slice %309 {offsets = [0, 0], sizes = [2, 96], strides = [1, 1]} : vector<2x128xf32> to vector<2x96xf32>
    %319 = arith.negf %318 : vector<2x96xf32>
    %320 = math.exp %319 : vector<2x96xf32>
    %cst_61 = arith.constant 1.000000e+00 : f32
    %321 = vector.broadcast %cst_61 : f32 to vector<2x96xf32>
    %322 = arith.addf %321, %320 : vector<2x96xf32>
    %323 = arith.divf %321, %322 : vector<2x96xf32>
    %324 = vector.extract_strided_slice %309 {offsets = [0, 96], sizes = [2, 32], strides = [1, 1]} : vector<2x128xf32> to vector<2x32xf32>
    %325 = math.tanh %324 : vector<2x32xf32>
    %326 = vector.extract_strided_slice %315 {offsets = [0, 32], sizes = [2, 32], strides = [1, 1]} : vector<2x96xf32> to vector<2x32xf32>
    %327 = arith.mulf %326, %282 : vector<2x32xf32>
    %328 = vector.extract_strided_slice %315 {offsets = [0, 0], sizes = [2, 32], strides = [1, 1]} : vector<2x96xf32> to vector<2x32xf32>
    %329 = arith.mulf %328, %317 : vector<2x32xf32>
    %330 = arith.addf %327, %329 : vector<2x32xf32>
    %331 = vector.extract_strided_slice %323 {offsets = [0, 32], sizes = [2, 32], strides = [1, 1]} : vector<2x96xf32> to vector<2x32xf32>
    %332 = arith.mulf %331, %287 : vector<2x32xf32>
    %333 = vector.extract_strided_slice %323 {offsets = [0, 0], sizes = [2, 32], strides = [1, 1]} : vector<2x96xf32> to vector<2x32xf32>
    %334 = arith.mulf %333, %325 : vector<2x32xf32>
    %335 = arith.addf %332, %334 : vector<2x32xf32>
    %336 = vector.extract_strided_slice %315 {offsets = [0, 64], sizes = [2, 32], strides = [1, 1]} : vector<2x96xf32> to vector<2x32xf32>
    %337 = math.tanh %330 : vector<2x32xf32>
    %338 = arith.mulf %336, %337 : vector<2x32xf32>
    %339 = vector.extract_strided_slice %323 {offsets = [0, 64], sizes = [2, 32], strides = [1, 1]} : vector<2x96xf32> to vector<2x32xf32>
    %340 = math.tanh %335 : vector<2x32xf32>
    %341 = arith.mulf %339, %340 : vector<2x32xf32>
    %342 = tpu.concatenate %338, %341 in 1 : vector<2x32xf32>, vector<2x32xf32> -> vector<2x64xf32>
    %c7_i32_62 = arith.constant 7 : i32
    %343 = arith.truncf %342 : vector<2x64xf32> to vector<2x64xbf16>
    %cst_63 = arith.constant dense<0.000000e+00> : vector<2x256xf32>
    %344 = tpu.matmul %343, %3, %cst_63 {dimension_numbers = #tpu.dot_dimension_numbers<[1], [0], [0], [1], [0, 0, 1, 1], [], []>} : vector<2x64xbf16>, vector<64x256xbf16>, vector<2x256xf32> -> vector<2x256xf32>
    %345 = arith.index_cast %c7_i32_62 : i32 to index
    %c0_64 = arith.constant 0 : index
    %c0_65 = arith.constant 0 : index
    %346 = vector.load %arg1[%345, %c0_64, %c0_65] : memref<8x2x128xbf16, #tpu.memory_space<vmem>>, vector<1x2x128xbf16>
    %347 = vector.shape_cast %346 : vector<1x2x128xbf16> to vector<2x128xbf16>
    %348 = arith.extf %347 : vector<2x128xbf16> to vector<2x128xf32>
    %349 = vector.extract_strided_slice %344 {offsets = [0, 0], sizes = [2, 128], strides = [1, 1]} : vector<2x256xf32> to vector<2x128xf32>
    %350 = arith.addf %348, %349 : vector<2x128xf32>
    %c7_i32_66 = arith.constant 7 : i32
    %351 = arith.subi %c7_i32_66, %c7_i32_62 : i32
    %352 = arith.index_cast %351 : i32 to index
    %c0_67 = arith.constant 0 : index
    %c0_68 = arith.constant 0 : index
    %353 = vector.load %arg2[%352, %c0_67, %c0_68] : memref<8x2x128xbf16, #tpu.memory_space<vmem>>, vector<1x2x128xbf16>
    %354 = vector.shape_cast %353 : vector<1x2x128xbf16> to vector<2x128xbf16>
    %355 = arith.extf %354 : vector<2x128xbf16> to vector<2x128xf32>
    %356 = vector.extract_strided_slice %344 {offsets = [0, 128], sizes = [2, 128], strides = [1, 1]} : vector<2x256xf32> to vector<2x128xf32>
    %357 = arith.addf %355, %356 : vector<2x128xf32>
    %358 = vector.extract_strided_slice %350 {offsets = [0, 0], sizes = [2, 96], strides = [1, 1]} : vector<2x128xf32> to vector<2x96xf32>
    %359 = arith.negf %358 : vector<2x96xf32>
    %360 = math.exp %359 : vector<2x96xf32>
    %cst_69 = arith.constant 1.000000e+00 : f32
    %361 = vector.broadcast %cst_69 : f32 to vector<2x96xf32>
    %362 = arith.addf %361, %360 : vector<2x96xf32>
    %363 = arith.divf %361, %362 : vector<2x96xf32>
    %364 = vector.extract_strided_slice %350 {offsets = [0, 96], sizes = [2, 32], strides = [1, 1]} : vector<2x128xf32> to vector<2x32xf32>
    %365 = math.tanh %364 : vector<2x32xf32>
    %366 = vector.extract_strided_slice %357 {offsets = [0, 0], sizes = [2, 96], strides = [1, 1]} : vector<2x128xf32> to vector<2x96xf32>
    %367 = arith.negf %366 : vector<2x96xf32>
    %368 = math.exp %367 : vector<2x96xf32>
    %cst_70 = arith.constant 1.000000e+00 : f32
    %369 = vector.broadcast %cst_70 : f32 to vector<2x96xf32>
    %370 = arith.addf %369, %368 : vector<2x96xf32>
    %371 = arith.divf %369, %370 : vector<2x96xf32>
    %372 = vector.extract_strided_slice %357 {offsets = [0, 96], sizes = [2, 32], strides = [1, 1]} : vector<2x128xf32> to vector<2x32xf32>
    %373 = math.tanh %372 : vector<2x32xf32>
    %374 = vector.extract_strided_slice %363 {offsets = [0, 32], sizes = [2, 32], strides = [1, 1]} : vector<2x96xf32> to vector<2x32xf32>
    %375 = arith.mulf %374, %330 : vector<2x32xf32>
    %376 = vector.extract_strided_slice %363 {offsets = [0, 0], sizes = [2, 32], strides = [1, 1]} : vector<2x96xf32> to vector<2x32xf32>
    %377 = arith.mulf %376, %365 : vector<2x32xf32>
    %378 = arith.addf %375, %377 : vector<2x32xf32>
    %379 = vector.extract_strided_slice %371 {offsets = [0, 32], sizes = [2, 32], strides = [1, 1]} : vector<2x96xf32> to vector<2x32xf32>
    %380 = arith.mulf %379, %335 : vector<2x32xf32>
    %381 = vector.extract_strided_slice %371 {offsets = [0, 0], sizes = [2, 32], strides = [1, 1]} : vector<2x96xf32> to vector<2x32xf32>
    %382 = arith.mulf %381, %373 : vector<2x32xf32>
    %383 = arith.addf %380, %382 : vector<2x32xf32>
    %384 = vector.extract_strided_slice %363 {offsets = [0, 64], sizes = [2, 32], strides = [1, 1]} : vector<2x96xf32> to vector<2x32xf32>
    %385 = math.tanh %378 : vector<2x32xf32>
    %386 = arith.mulf %384, %385 : vector<2x32xf32>
    %387 = vector.extract_strided_slice %371 {offsets = [0, 64], sizes = [2, 32], strides = [1, 1]} : vector<2x96xf32> to vector<2x32xf32>
    %388 = math.tanh %383 : vector<2x32xf32>
    %389 = arith.mulf %387, %388 : vector<2x32xf32>
    %390 = tpu.concatenate %386, %389 in 1 : vector<2x32xf32>, vector<2x32xf32> -> vector<2x64xf32>
    %c8_i32 = arith.constant 8 : i32
    %c0_71 = arith.constant 0 : index
    %c0_72 = arith.constant 0 : index
    %391 = vector.load %arg5[%c0_71, %c0_72] : memref<2x64xf32, #tpu.memory_space<vmem>>, vector<2x64xf32>
    tpu.vector_store %arg5[%c0_71, %c0_72], %390 {strides = array<i32>} : memref<2x64xf32, #tpu.memory_space<vmem>>, vector<2x64xf32>,
    %392 = tpu.concatenate %378, %383 in 1 : vector<2x32xf32>, vector<2x32xf32> -> vector<2x64xf32>
    %c0_73 = arith.constant 0 : index
    %c0_74 = arith.constant 0 : index
    %393 = vector.load %arg6[%c0_73, %c0_74] : memref<2x64xf32, #tpu.memory_space<vmem>>, vector<2x64xf32>
    tpu.vector_store %arg6[%c0_73, %c0_74], %392 {strides = array<i32>} : memref<2x64xf32, #tpu.memory_space<vmem>>, vector<2x64xf32>,
    %c0_i32_75 = arith.constant 0 : i32
    %394 = arith.cmpi eq, %arg0, %c0_i32_75 : i32
    %395 = arith.extui %394 : i1 to i32
    %c0_i32_76 = arith.constant 0 : i32
    %396 = arith.cmpi ne, %395, %c0_i32_76 : i32
    scf.if %396 {
      %397 = tpu.concatenate %390, %378, %383 in 1 : vector<2x64xf32>, vector<2x32xf32>, vector<2x32xf32> -> vector<2x128xf32>
      %c0_77 = arith.constant 0 : index
      %c0_78 = arith.constant 0 : index
      %398 = vector.load %arg4[%c0_77, %c0_78] : memref<2x128xf32, #tpu.memory_space<vmem>>, vector<2x128xf32>
      tpu.vector_store %arg4[%c0_77, %c0_78], %397 {strides = array<i32>} : memref<2x128xf32, #tpu.memory_space<vmem>>, vector<2x128xf32>,
    } else {
    }
    return
  }
  func.func @transform_0(%arg0: i32) -> (i32, i32, i32) {
    %c0_i32 = arith.constant 0 : i32
    %c0_i32_0 = arith.constant 0 : i32
    %c0_i32_1 = arith.constant 0 : i32
    return %arg0, %c0_i32, %c0_i32_0 : i32, i32, i32
  }
  func.func @transform_1(%arg0: i32) -> (i32, i32, i32) {
    %c0_i32 = arith.constant 0 : i32
    %0 = arith.subi %c0_i32, %arg0 : i32
    %c0_i32_0 = arith.constant 0 : i32
    %c1_i32 = arith.constant 1 : i32
    %c0_i32_1 = arith.constant 0 : i32
    return %0, %c0_i32_0, %c1_i32 : i32, i32, i32
  }
  func.func @transform_2(%arg0: i32) -> (i32, i32) {
    %c0_i32 = arith.constant 0 : i32
    %c0_i32_0 = arith.constant 0 : i32
    %c0_i32_1 = arith.constant 0 : i32
    return %c0_i32, %c0_i32_0 : i32, i32
  }
  func.func @transform_3(%arg0: i32) -> (i32, i32) {
    %c0_i32 = arith.constant 0 : i32
    %c0_i32_0 = arith.constant 0 : i32
    %c0_i32_1 = arith.constant 0 : i32
    return %c0_i32, %c0_i32_0 : i32, i32
  }
}

</mosaic_0001>

<bundles_post_ra>
// kernel: encoder_forward.1
= control target key start
LH: loop header
LB: loop body
LE: loop exit
PB: predicated region body
PF: predicated region fallthrough
CT: control target
= control target key end

     0   :  { %vm164_vm0 = vcmask 517120   ;;  %v1457_v2 = vmov 0   ;;  %v288_v3 = vlaneseq  ;;  %v1458_v5 = vmov 0.0   ;;  %s1460_s30 = smov 32   ;;  %s1461_s7 = smov 64   ;;  %s1801_s0 = inlined_call_operand.vmem [shape: bf16[8,2,256], index: 0, kind: input, shape index: {}, may-alias: {0,1}]   ;;  %s1802_s1 = inlined_call_operand.vmem [shape: bf16[8,2,256], index: 1, kind: input, shape index: {}, may-alias: {0,1}]   ;;  %s1803_s2 = inlined_call_operand.vmem [shape: bf16[64,256], index: 2, kind: input, shape index: {}]   ;;  %s1804_s3 = inlined_call_operand.vmem [shape: f32[2,128], index: 3, kind: output, shape index: {}]  }
   0x1   :  { %v1486_v0 = vld [vmem:[%s1803_s2 + $0x4] ss:$8 sps:$4 sm:$0xff]   ;;  %v1491_v1 = vld [vmem:[%s1803_s2] ss:$8 sps:$4 sm:$0xff]   ;;  %254 = vmatprep.mubr.bf16.mxu0 %v1457_v2  ;;  %389 = vmatprep.mubr.bf16.mxu1 %v1457_v2  ;;  %v1499_v4 = vld [vmem:[%s1803_s2 + $0x14] ss:$8 sps:$4 sm:$0xff]  }
   0x2   :  { %222 = vmatprep.subr.bf16.mxu0 %v1486_v0  ;;  %165 = vst.msk [vmem:[#allocation2] sm:$0x3] %vm164_vm0, %v1458_v5  ;;  %166 = vst.msk [vmem:[#allocation3] sm:$0x3] %vm164_vm0, %v1458_v5  ;;  %357 = vmatprep.subr.bf16.mxu1 %v1486_v0  ;;  %v1508_v6 = vld [vmem:[%s1803_s2 + $0x10] ss:$8 sps:$4 sm:$0xff]  }
   0x3   :  { %223 = vmatpush1.bf16.msra.mxu0 %v1491_v1  ;;  %358 = vmatpush1.bf16.msra.mxu1 %v1491_v1  ;;  %v1515_v7 = vld [vmem:[%s1803_s2 + $0x24] ss:$8 sps:$4 sm:$0xff]   ;;  %v1459_v8 = vmov 1983009808   ;;  %v289_v10 = vshrl.u32 %v288_v3, 7  ;;  %vm218_vm1 = vcmask 523264  }
   0x4   :  { %224 = vmatprep.subr.bf16.mxu0 %v1499_v4  ;;  %359 = vmatprep.subr.bf16.mxu1 %v1499_v4  ;;  %v286_v9 = vunpack.c.l.s4 %v1459_v8  ;;  %v25_v11 = vld [vmem:[%s1801_s0] sm:$0x1]  ;;  %v1532_v14 = vld [vmem:[%s1803_s2 + $0x34] ss:$8 sps:$4 sm:$0xff]   ;;  %v1543_v17 = vld [vmem:[%s1803_s2 + $0x30] ss:$8 sps:$4 sm:$0xff]  }
   0x5   :  { %26 = vst [vmem:[#allocation4] sm:$0x1] %v25_v11  ;;  %v1525_v12 = vld [vmem:[%s1803_s2 + $0x20] ss:$8 sps:$4 sm:$0xff]   ;;  %v1278_v21 = vld [vmem:[%s1802_s1 + $0xf] sm:$0x1] }
   0x6   :  { %v287_v13 = vunpack.c.0.s8 %v286_v9  ;;  %114 = vst [vmem:[#allocation5 + $0x7] sm:$0x1] %v1278_v21  ;;  %v27_v55 = vld [vmem:[%s1801_s0 + $0x2] sm:$0x1]  ;;  %s1462_s8 = smov 96   ;;  %vm351_vm2 = vcmask 261120  }
   0x7   :  { %225 = vmatpush1.bf16.msra.mxu0 %v1508_v6  ;;  %360 = vmatpush1.bf16.msra.mxu1 %v1508_v6  ;;  %28 = vst [vmem:[#allocation4 + $0x1] sm:$0x1] %v27_v55  ;;  %v1277_v8 = vld [vmem:[%s1802_s1 + $0xd] sm:$0x1]  ;;  %vm1253_vm3 = vcmask 785408  }
   0x8   :  { %226 = vmatprep.subr.bf16.mxu0 %v1515_v7  ;;  %361 = vmatprep.subr.bf16.mxu1 %v1515_v7  ;;  %v1537_v16 = vsub.s32 %v287_v13, %v289_v10  ;;  %112 = vst [vmem:[#allocation5 + $0x6] sm:$0x1] %v1277_v8 }
   0x9   :  { %v1535_v15 = vld [vmem:[#allocation3] sm:$0x3]  ;;  %v175_v18 = vld [vmem:[#allocation2] sm:$0x3] }
   0xa   :  { %v291_v19 = vrot.slane %v1535_v15, %v1537_v16  ;;  %v177_v20 = vpack.c.bf16 %v175_v18, %v175_v18 }
   0xb   :  { %227 = vmatpush1.bf16.msra.mxu0 %v1525_v12  ;;  %362 = vmatpush1.bf16.msra.mxu1 %v1525_v12 }
   0xc   :  { %228 = vmatprep.subr.bf16.mxu0 %v1532_v14  ;;  %363 = vmatprep.subr.bf16.mxu1 %v1532_v14  ;;  %v263_v22 = vld [vmem:[#allocation4] sm:$0x1] }
   0xd   :  { %292 = vrot.lane.b32.xlu1 %v291_v19, %s1460_s30  ;;  %v267_v23 = vld [vmem:[#allocation5 + $0x7] sm:$0x1]  ;;  %v264_v24 = vunpack.c.l.bf16 %v263_v22 }
   0xe   :  { %v268_v25 = vunpack.c.l.bf16 %v267_v23  ;;  %v399_v9 = vld [vmem:[#allocation4 + $0x1] sm:$0x1] }
   0xf   :  { %229 = vmatpush1.bf16.msra.mxu0 %v1543_v17  ;;  %364 = vmatpush1.bf16.msra.mxu1 %v1543_v17  ;;  %v403_v10 = vld [vmem:[#allocation5 + $0x6] sm:$0x1]  ;;  %v400_v11 = vunpack.c.l.bf16 %v399_v9 }
  0x10   :  { %481 = vmatprep.subr.bf16.mxu0 %v1486_v0  ;;  %605 = vmatprep.subr.bf16.mxu1 %v1486_v0  ;;  %v404_v13 = vunpack.c.l.bf16 %v403_v10 }
  0x12   :  { %1287 = vmatmul.mubr.msk.bf16.vlgmr.msra.gmra.mrb[0].mxu0 %vm218_vm1, %v177_v20 }
  0x13   :  { %482 = vmatpush1.bf16.msra.mxu0 %v1491_v1  ;;  %513 = vmatprep.mubr.bf16.mxu0 %v1457_v2 }
  0x14   :  { %483 = vmatprep.subr.bf16.mxu0 %v1499_v4 }
  0x17   :  { %484 = vmatpush1.bf16.msra.mxu0 %v1508_v6 }
  0x18   :  { %485 = vmatprep.subr.bf16.mxu0 %v1515_v7 }
  0x1b   :  { %486 = vmatpush1.bf16.msra.mxu0 %v1525_v12 }
  0x1c   :  { %487 = vmatprep.subr.bf16.mxu0 %v1532_v14 }
  0x1f   :  { %488 = vmatpush1.bf16.msra.mxu0 %v1543_v17 }
  0x20   :  { %729 = vmatprep.subr.bf16.mxu0 %v1486_v0 }
  0x7f   :  { %v293_v46 = vpop.permute.xlu1 %292 }
  0xe5   :  { %v256_v26 = vpop.f32.mrb[0].mxu0 }
  0xe6   :  { %v265_v27 = vadd.f32 %v264_v24, %v256_v26  ;;  %v258_v28 = vpop.f32.mrb[1].mxu0 }
  0xe7   :  { %v260_v29 = vpop.f32.mrb[2].mxu0  ;;  %v269_v30 = vadd.f32 %v268_v25, %v258_v28 }
  0xe8   :  { %1329 = vtanh.f32 %v265_v27  ;;  %v261_v31 = vpop.f32.mrb[3].mxu0  ;;  %v1288_v34 = vmul.f32 -1.442695, %v265_v27 }
  0xe9   :  { %1331 = vtanh.f32 %v269_v30  ;;  %v1289_v35 = vmul.f32 -1.442695, %v269_v30 }
  0xea   :  { %1333 = vpow2.f32 %v1288_v34 }
  0xeb   :  { %1335 = vpow2.f32 %v1289_v35 }
  0xf2   :  { %v1330_v32 = vpop.eup %1329 }
  0xf3   :  { %297 = vrot.lane.b32.xlu0 %v1330_v32, %s1460_s30  ;;  %v1332_v33 = vpop.eup %1331 }
  0xf4   :  { %v1334_v36 = vpop.eup %1333 }
  0xf5   :  { %v273_v37 = vadd.f32 1.0, %v1334_v36  ;;  %v1336_v38 = vpop.eup %1335 }
  0xf6   :  { %v280_v39 = vadd.f32 1.0, %v1336_v38 }
  0xf7   :  { %308 = vrot.lane.b32.xlu0 %v1332_v33, %s1460_s30  ;;  %1337 = vrcp.f32 %v273_v37 }
  0xf8   :  { %1339 = vrcp.f32 %v280_v39 }
 0x101   :  { %v1338_v40 = vpop.eup %1337 }
 0x102   :  { %v1340_v43 = vpop.eup %1339  ;;  %v295_v47 = vmul.f32 %v1338_v40, %v293_v46 }
 0x103   :  { %v306_v50 = vmul.f32 %v1340_v43, %v1535_v15 }
 0x165   :  { %v298_v41 = vpop.permute.xlu0 %297 }
 0x166   :  { %v300_v42 = vmul.f32 %v1338_v40, %v298_v41 }
 0x168   :  { %302 = vrot.lane.b32.xlu1 %v300_v42, %s1460_s30 }
 0x169   :  { %v309_v44 = vpop.permute.xlu0 %308 }
 0x16a   :  { %v311_v45 = vmul.f32 %v1340_v43, %v309_v44 }
 0x16c   :  { %313 = vrot.lane.b32.xlu0 %v311_v45, %s1460_s30  ;;  %v29_v45 = vld [vmem:[%s1801_s0 + $0x4] sm:$0x1] }
 0x16d   :  { %30 = vst [vmem:[#allocation4 + $0x2] sm:$0x1] %v29_v45 }
 0x1da   :  { %v303_v48 = vpop.permute.xlu1 %302 }
 0x1db   :  { %v1572_v49 = vadd.f32 %v303_v48, %v295_v47 }
 0x1dd   :  { %1341 = vtanh.f32 %v1572_v49 }
 0x1de   :  { %v314_v51 = vpop.permute.xlu0 %313 }
 0x1df   :  { %v1576_v52 = vadd.f32 %v314_v51, %v306_v50 }
 0x1e1   :  { %1343 = vtanh.f32 %v1576_v52 }
 0x1e7   :  { %v1342_v53 = vpop.eup %1341 }
 0x1e8   :  { %319 = vrot.lane.b32.xlu1 %v1342_v53, %s1460_s30 }
 0x1eb   :  { %v1344_v54 = vpop.eup %1343 }
 0x1ec   :  { %325 = vrot.lane.b32.xlu0 %v1344_v54, %s1460_s30 }
 0x25a   :  { %v320_v56 = vpop.permute.xlu1 %319 }
 0x25b   :  { %v322_v57 = vmul.f32 %v1338_v40, %v320_v56  ;;  %v1276_v56 = vld [vmem:[%s1802_s1 + $0xb] sm:$0x1] }
 0x25c   :  { %110 = vst [vmem:[#allocation5 + $0x5] sm:$0x1] %v1276_v56 }
 0x25d   :  { %v336_v58 = vrot.slane %v322_v57, %v1537_v16  ;;  %v523_v57 = vld [vmem:[#allocation4 + $0x2] sm:$0x1] }
 0x25e   :  { %v326_v59 = vpop.permute.xlu0 %325 }
 0x25f   :  { %v328_v60 = vmul.f32 %v1340_v43, %v326_v59  ;;  %337 = vrot.lane.b32.xlu1 %v336_v58, %s1461_s7  ;;  %v524_v59 = vunpack.c.l.bf16 %v523_v57 }
 0x261   :  { %v347_v61 = vrot.slane %v328_v60, %v1537_v16 }
 0x263   :  { %348 = vrot.lane.b32.xlu0 %v347_v61, %s1462_s8  ;;  %v527_v58 = vld [vmem:[#allocation5 + $0x5] sm:$0x1] }
 0x264   :  { %v528_v60 = vunpack.c.l.bf16 %v527_v58 }
 0x2d1   :  { %v338_v62 = vpop.permute.xlu1 %337 }
 0x2d5   :  { %v349_v63 = vpop.permute.xlu0 %348 }
 0x2d6   :  { %v352_v3 = vsel %vm351_vm2, %v338_v62, %v349_v63 }
 0x2d7   :  { %v353_v5 = vpack.c.bf16 %v352_v3, %v352_v3 }
 0x2d9   :  { %1290 = vmatmul.mubr.msk.bf16.vlgmr.msra.gmra.mrb[0].mxu1 %vm218_vm1, %v353_v5 }
 0x2da   :  { %606 = vmatpush1.bf16.msra.mxu1 %v1491_v1  ;;  %637 = vmatprep.mubr.bf16.mxu1 %v1457_v2 }
 0x2db   :  { %607 = vmatprep.subr.bf16.mxu1 %v1499_v4 }
 0x2de   :  { %608 = vmatpush1.bf16.msra.mxu1 %v1508_v6 }
 0x2df   :  { %609 = vmatprep.subr.bf16.mxu1 %v1515_v7 }
 0x2e2   :  { %610 = vmatpush1.bf16.msra.mxu1 %v1525_v12 }
 0x2e3   :  { %611 = vmatprep.subr.bf16.mxu1 %v1532_v14 }
 0x2e6   :  { %612 = vmatpush1.bf16.msra.mxu1 %v1543_v17 }
 0x2e7   :  { %853 = vmatprep.subr.bf16.mxu1 %v1486_v0 }
 0x3ac   :  { %v391_v15 = vpop.f32.mrb[0].mxu1 }
 0x3ad   :  { %v401_v18 = vadd.f32 %v400_v11, %v391_v15  ;;  %v393_v19 = vpop.f32.mrb[1].mxu1 }
 0x3ae   :  { %v405_v20 = vadd.f32 %v404_v13, %v393_v19  ;;  %v395_v21 = vpop.f32.mrb[2].mxu1 }
 0x3af   :  { %1345 = vtanh.f32 %v401_v18  ;;  %v396_v22 = vpop.f32.mrb[3].mxu1  ;;  %v1291_v25 = vmul.f32 -1.442695, %v401_v18 }
 0x3b0   :  { %1347 = vtanh.f32 %v405_v20  ;;  %v1292_v26 = vmul.f32 -1.442695, %v405_v20 }
 0x3b1   :  { %1349 = vpow2.f32 %v1291_v25 }
 0x3b2   :  { %1351 = vpow2.f32 %v1292_v26 }
 0x3b9   :  { %v1346_v23 = vpop.eup %1345 }
 0x3ba   :  { %v1348_v24 = vpop.eup %1347  ;;  %422 = vrot.lane.b32.xlu1 %v1346_v23, %s1460_s30 }
 0x3bb   :  { %433 = vrot.lane.b32.xlu0 %v1348_v24, %s1460_s30  ;;  %v1350_v27 = vpop.eup %1349 }
 0x3bc   :  { %v1352_v28 = vpop.eup %1351  ;;  %v409_v29 = vadd.f32 1.0, %v1350_v27 }
 0x3bd   :  { %v416_v30 = vadd.f32 1.0, %v1352_v28 }
 0x3be   :  { %1353 = vrcp.f32 %v409_v29 }
 0x3bf   :  { %1355 = vrcp.f32 %v416_v30 }
 0x3c8   :  { %v1354_v31 = vpop.eup %1353 }
 0x3c9   :  { %v1356_v33 = vpop.eup %1355  ;;  %v420_v37 = vmul.f32 %v1354_v31, %v1572_v49 }
 0x3ca   :  { %v431_v39 = vmul.f32 %v1356_v33, %v1576_v52 }
 0x42c   :  { %v423_v32 = vpop.permute.xlu1 %422 }
 0x42d   :  { %v425_v34 = vmul.f32 %v1354_v31, %v423_v32  ;;  %v434_v35 = vpop.permute.xlu0 %433 }
 0x42e   :  { %v436_v36 = vmul.f32 %v1356_v33, %v434_v35  ;;  %v31_v35 = vld [vmem:[%s1801_s0 + $0x6] sm:$0x1] }
 0x42f   :  { %427 = vrot.lane.b32.xlu1 %v425_v34, %s1460_s30  ;;  %32 = vst [vmem:[#allocation4 + $0x3] sm:$0x1] %v31_v35  ;;  %v1274_v35 = vld [vmem:[%s1802_s1 + $0x7] sm:$0x1] }
 0x430   :  { %438 = vrot.lane.b32.xlu0 %v436_v36, %s1460_s30  ;;  %106 = vst [vmem:[#allocation5 + $0x3] sm:$0x1] %v1274_v35 }
 0x4a1   :  { %v428_v38 = vpop.permute.xlu1 %427 }
 0x4a2   :  { %v1608_v40 = vadd.f32 %v428_v38, %v420_v37  ;;  %v439_v41 = vpop.permute.xlu0 %438 }
 0x4a3   :  { %v1610_v42 = vadd.f32 %v439_v41, %v431_v39 }
 0x4a4   :  { %1357 = vtanh.f32 %v1608_v40 }
 0x4a5   :  { %1359 = vtanh.f32 %v1610_v42 }
 0x4ae   :  { %v1358_v43 = vpop.eup %1357 }
 0x4af   :  { %v1360_v44 = vpop.eup %1359  ;;  %444 = vrot.lane.b32.xlu1 %v1358_v43, %s1460_s30 }
 0x4b0   :  { %450 = vrot.lane.b32.xlu0 %v1360_v44, %s1460_s30 }
 0x521   :  { %v445_v46 = vpop.permute.xlu1 %444 }
 0x522   :  { %v447_v47 = vmul.f32 %v1354_v31, %v445_v46  ;;  %v451_v48 = vpop.permute.xlu0 %450  ;;  %v1275_v46 = vld [vmem:[%s1802_s1 + $0x9] sm:$0x1] }
 0x523   :  { %v453_v49 = vmul.f32 %v1356_v33, %v451_v48  ;;  %108 = vst [vmem:[#allocation5 + $0x4] sm:$0x1] %v1275_v46 }
 0x524   :  { %v461_v50 = vrot.slane %v447_v47, %v1537_v16  ;;  %v647_v47 = vld [vmem:[#allocation4 + $0x3] sm:$0x1] }
 0x525   :  { %v472_v51 = vrot.slane %v453_v49, %v1537_v16  ;;  %v648_v49 = vunpack.c.l.bf16 %v647_v47 }
 0x526   :  { %462 = vrot.lane.b32.xlu1 %v461_v50, %s1461_s7 }
 0x527   :  { %473 = vrot.lane.b32.xlu0 %v472_v51, %s1462_s8 }
 0x52a   :  { %v651_v48 = vld [vmem:[#allocation5 + $0x4] sm:$0x1] }
 0x52b   :  { %v652_v50 = vunpack.c.l.bf16 %v651_v48 }
 0x598   :  { %v463_v52 = vpop.permute.xlu1 %462 }
 0x599   :  { %v474_v53 = vpop.permute.xlu0 %473 }
 0x59a   :  { %v476_v54 = vsel %vm351_vm2, %v463_v52, %v474_v53 }
 0x59b   :  { %v477_v55 = vpack.c.bf16 %v476_v54, %v476_v54 }
 0x59d   :  { %1293 = vmatmul.mubr.msk.bf16.vlgmr.msra.gmra.mrb[4].mxu0 %vm218_vm1, %v477_v55 }
 0x59e   :  { %730 = vmatpush1.bf16.msra.mxu0 %v1491_v1  ;;  %761 = vmatprep.mubr.bf16.mxu0 %v1457_v2 }
 0x59f   :  { %731 = vmatprep.subr.bf16.mxu0 %v1499_v4 }
 0x5a2   :  { %732 = vmatpush1.bf16.msra.mxu0 %v1508_v6 }
 0x5a3   :  { %733 = vmatprep.subr.bf16.mxu0 %v1515_v7 }
 0x5a6   :  { %734 = vmatpush1.bf16.msra.mxu0 %v1525_v12 }
 0x5a7   :  { %735 = vmatprep.subr.bf16.mxu0 %v1532_v14 }
 0x5aa   :  { %736 = vmatpush1.bf16.msra.mxu0 %v1543_v17 }
 0x5ab   :  { %977 = vmatprep.subr.bf16.mxu0 %v1486_v0 }
 0x670   :  { %v515_v61 = vpop.f32.mrb[4].mxu0 }
 0x671   :  { %v525_v62 = vadd.f32 %v524_v59, %v515_v61  ;;  %v517_v63 = vpop.f32.mrb[5].mxu0 }
 0x672   :  { %v529_v3 = vadd.f32 %v528_v60, %v517_v63  ;;  %v519_v5 = vpop.f32.mrb[6].mxu0 }
 0x673   :  { %1361 = vtanh.f32 %v525_v62  ;;  %v520_v8 = vpop.f32.mrb[7].mxu0  ;;  %v1294_v11 = vmul.f32 -1.442695, %v525_v62 }
 0x674   :  { %1363 = vtanh.f32 %v529_v3  ;;  %v1295_v13 = vmul.f32 -1.442695, %v529_v3 }
 0x675   :  { %1365 = vpow2.f32 %v1294_v11 }
 0x676   :  { %1367 = vpow2.f32 %v1295_v13 }
 0x67d   :  { %v1362_v9 = vpop.eup %1361 }
 0x67e   :  { %v1364_v10 = vpop.eup %1363  ;;  %546 = vrot.lane.b32.xlu1 %v1362_v9, %s1460_s30 }
 0x67f   :  { %557 = vrot.lane.b32.xlu0 %v1364_v10, %s1460_s30  ;;  %v1366_v15 = vpop.eup %1365 }
 0x680   :  { %v1368_v18 = vpop.eup %1367  ;;  %v533_v19 = vadd.f32 1.0, %v1366_v15 }
 0x681   :  { %v540_v20 = vadd.f32 1.0, %v1368_v18 }
 0x682   :  { %1369 = vrcp.f32 %v533_v19 }
 0x683   :  { %1371 = vrcp.f32 %v540_v20 }
 0x68c   :  { %v1370_v21 = vpop.eup %1369 }
 0x68d   :  { %v1372_v23 = vpop.eup %1371  ;;  %v544_v27 = vmul.f32 %v1370_v21, %v1608_v40 }
 0x68e   :  { %v555_v29 = vmul.f32 %v1372_v23, %v1610_v42 }
 0x6f0   :  { %v547_v22 = vpop.permute.xlu1 %546 }
 0x6f1   :  { %v549_v24 = vmul.f32 %v1370_v21, %v547_v22  ;;  %v558_v25 = vpop.permute.xlu0 %557 }
 0x6f2   :  { %v560_v26 = vmul.f32 %v1372_v23, %v558_v25 }
 0x6f3   :  { %551 = vrot.lane.b32.xlu1 %v549_v24, %s1460_s30  ;;  %v33_v24 = vld [vmem:[%s1801_s0 + $0x8] sm:$0x1] }
 0x6f4   :  { %562 = vrot.lane.b32.xlu0 %v560_v26, %s1460_s30  ;;  %34 = vst [vmem:[#allocation4 + $0x4] sm:$0x1] %v33_v24  ;;  %v1273_v24 = vld [vmem:[%s1802_s1 + $0x5] sm:$0x1] }
 0x6f5   :  { %104 = vst [vmem:[#allocation5 + $0x2] sm:$0x1] %v1273_v24 }
 0x765   :  { %v552_v28 = vpop.permute.xlu1 %551 }
 0x766   :  { %v1643_v30 = vadd.f32 %v552_v28, %v544_v27  ;;  %v563_v31 = vpop.permute.xlu0 %562 }
 0x767   :  { %v1645_v32 = vadd.f32 %v563_v31, %v555_v29 }
 0x768   :  { %1373 = vtanh.f32 %v1643_v30 }
 0x769   :  { %1375 = vtanh.f32 %v1645_v32 }
 0x772   :  { %v1374_v33 = vpop.eup %1373 }
 0x773   :  { %v1376_v34 = vpop.eup %1375  ;;  %568 = vrot.lane.b32.xlu1 %v1374_v33, %s1460_s30 }
 0x774   :  { %574 = vrot.lane.b32.xlu0 %v1376_v34, %s1460_s30 }
 0x7e5   :  { %v569_v36 = vpop.permute.xlu1 %568 }
 0x7e6   :  { %v571_v37 = vmul.f32 %v1370_v21, %v569_v36  ;;  %v575_v38 = vpop.permute.xlu0 %574  ;;  %v771_v36 = vld [vmem:[#allocation4 + $0x4] sm:$0x1] }
 0x7e7   :  { %v577_v39 = vmul.f32 %v1372_v23, %v575_v38  ;;  %v772_v38 = vunpack.c.l.bf16 %v771_v36 }
 0x7e8   :  { %v585_v40 = vrot.slane %v571_v37, %v1537_v16  ;;  %v775_v37 = vld [vmem:[#allocation5 + $0x3] sm:$0x1] }
 0x7e9   :  { %v596_v41 = vrot.slane %v577_v39, %v1537_v16  ;;  %v776_v39 = vunpack.c.l.bf16 %v775_v37 }
 0x7ea   :  { %586 = vrot.lane.b32.xlu1 %v585_v40, %s1461_s7 }
 0x7eb   :  { %597 = vrot.lane.b32.xlu0 %v596_v41, %s1462_s8 }
 0x85c   :  { %v587_v42 = vpop.permute.xlu1 %586 }
 0x85d   :  { %v598_v43 = vpop.permute.xlu0 %597 }
 0x85e   :  { %v600_v44 = vsel %vm351_vm2, %v587_v42, %v598_v43 }
 0x85f   :  { %v601_v45 = vpack.c.bf16 %v600_v44, %v600_v44 }
 0x861   :  { %1296 = vmatmul.mubr.msk.bf16.vlgmr.msra.gmra.mrb[4].mxu1 %vm218_vm1, %v601_v45 }
 0x862   :  { %854 = vmatpush1.bf16.msra.mxu1 %v1491_v1  ;;  %885 = vmatprep.mubr.bf16.mxu1 %v1457_v2 }
 0x863   :  { %855 = vmatprep.subr.bf16.mxu1 %v1499_v4 }
 0x866   :  { %856 = vmatpush1.bf16.msra.mxu1 %v1508_v6 }
 0x867   :  { %857 = vmatprep.subr.bf16.mxu1 %v1515_v7 }
 0x86a   :  { %858 = vmatpush1.bf16.msra.mxu1 %v1525_v12 }
 0x86b   :  { %859 = vmatprep.subr.bf16.mxu1 %v1532_v14 }
 0x86e   :  { %860 = vmatpush1.bf16.msra.mxu1 %v1543_v17 }
 0x86f   :  { %1101 = vmatprep.subr.bf16.mxu1 %v1486_v0 }
 0x934   :  { %v639_v51 = vpop.f32.mrb[4].mxu1 }
 0x935   :  { %v649_v52 = vadd.f32 %v648_v49, %v639_v51  ;;  %v641_v53 = vpop.f32.mrb[5].mxu1 }
 0x936   :  { %v653_v54 = vadd.f32 %v652_v50, %v641_v53  ;;  %v643_v55 = vpop.f32.mrb[6].mxu1 }
 0x937   :  { %1377 = vtanh.f32 %v649_v52  ;;  %v644_v56 = vpop.f32.mrb[7].mxu1  ;;  %v1297_v0 = vmul.f32 -1.442695, %v649_v52 }
 0x938   :  { %1379 = vtanh.f32 %v653_v54  ;;  %v1298_v59 = vmul.f32 -1.442695, %v653_v54 }
 0x939   :  { %1381 = vpow2.f32 %v1297_v0 }
 0x93a   :  { %1383 = vpow2.f32 %v1298_v59 }
 0x941   :  { %v1378_v57 = vpop.eup %1377 }
 0x942   :  { %v1380_v58 = vpop.eup %1379  ;;  %670 = vrot.lane.b32.xlu1 %v1378_v57, %s1460_s30 }
 0x943   :  { %681 = vrot.lane.b32.xlu0 %v1380_v58, %s1460_s30  ;;  %v1382_v60 = vpop.eup %1381 }
 0x944   :  { %v1384_v61 = vpop.eup %1383  ;;  %v657_v62 = vadd.f32 1.0, %v1382_v60 }
 0x945   :  { %v664_v63 = vadd.f32 1.0, %v1384_v61 }
 0x946   :  { %1385 = vrcp.f32 %v657_v62 }
 0x947   :  { %1387 = vrcp.f32 %v664_v63 }
 0x950   :  { %v1386_v3 = vpop.eup %1385 }
 0x951   :  { %v1388_v8 = vpop.eup %1387  ;;  %v668_v13 = vmul.f32 %v1386_v3, %v1643_v30 }
 0x952   :  { %v679_v18 = vmul.f32 %v1388_v8, %v1645_v32 }
 0x9b4   :  { %v671_v5 = vpop.permute.xlu1 %670 }
 0x9b5   :  { %v673_v9 = vmul.f32 %v1386_v3, %v671_v5  ;;  %v682_v10 = vpop.permute.xlu0 %681 }
 0x9b6   :  { %v684_v11 = vmul.f32 %v1388_v8, %v682_v10 }
 0x9b7   :  { %675 = vrot.lane.b32.xlu1 %v673_v9, %s1460_s30  ;;  %v35_v9 = vld [vmem:[%s1801_s0 + $0xa] sm:$0x1] }
 0x9b8   :  { %686 = vrot.lane.b32.xlu0 %v684_v11, %s1460_s30  ;;  %36 = vst [vmem:[#allocation4 + $0x5] sm:$0x1] %v35_v9 }
 0xa29   :  { %v676_v15 = vpop.permute.xlu1 %675 }
 0xa2a   :  { %v1678_v19 = vadd.f32 %v676_v15, %v668_v13  ;;  %v687_v20 = vpop.permute.xlu0 %686 }
 0xa2b   :  { %v1680_v21 = vadd.f32 %v687_v20, %v679_v18 }
 0xa2c   :  { %1389 = vtanh.f32 %v1678_v19 }
 0xa2d   :  { %1391 = vtanh.f32 %v1680_v21 }
 0xa36   :  { %v1390_v22 = vpop.eup %1389 }
 0xa37   :  { %v1392_v23 = vpop.eup %1391  ;;  %692 = vrot.lane.b32.xlu1 %v1390_v22, %s1460_s30 }
 0xa38   :  { %698 = vrot.lane.b32.xlu0 %v1392_v23, %s1460_s30 }
 0xaa9   :  { %v693_v25 = vpop.permute.xlu1 %692 }
 0xaaa   :  { %v695_v26 = vmul.f32 %v1386_v3, %v693_v25  ;;  %v699_v27 = vpop.permute.xlu0 %698  ;;  %v899_v25 = vld [vmem:[#allocation5 + $0x2] sm:$0x1] }
 0xaab   :  { %v701_v28 = vmul.f32 %v1388_v8, %v699_v27 }
 0xaac   :  { %v709_v29 = vrot.slane %v695_v26, %v1537_v16  ;;  %v900_v26 = vunpack.c.l.bf16 %v899_v25 }
 0xaad   :  { %v720_v30 = vrot.slane %v701_v28, %v1537_v16 }
 0xaae   :  { %710 = vrot.lane.b32.xlu1 %v709_v29, %s1461_s7 }
 0xaaf   :  { %721 = vrot.lane.b32.xlu0 %v720_v30, %s1462_s8 }
 0xb20   :  { %v711_v31 = vpop.permute.xlu1 %710 }
 0xb21   :  { %v722_v32 = vpop.permute.xlu0 %721 }
 0xb22   :  { %v724_v33 = vsel %vm351_vm2, %v711_v31, %v722_v32 }
 0xb23   :  { %v725_v34 = vpack.c.bf16 %v724_v33, %v724_v33 }
 0xb25   :  { %1299 = vmatmul.mubr.msk.bf16.vlgmr.msra.gmra.mrb[8].mxu0 %vm218_vm1, %v725_v34 }
 0xb26   :  { %978 = vmatpush1.bf16.msra.mxu0 %v1491_v1  ;;  %1009 = vmatprep.mubr.bf16.mxu0 %v1457_v2 }
 0xb27   :  { %979 = vmatprep.subr.bf16.mxu0 %v1499_v4 }
 0xb2a   :  { %980 = vmatpush1.bf16.msra.mxu0 %v1508_v6 }
 0xb2b   :  { %981 = vmatprep.subr.bf16.mxu0 %v1515_v7 }
 0xb2e   :  { %982 = vmatpush1.bf16.msra.mxu0 %v1525_v12 }
 0xb2f   :  { %983 = vmatprep.subr.bf16.mxu0 %v1532_v14 }
 0xb32   :  { %984 = vmatpush1.bf16.msra.mxu0 %v1543_v17 }
 0xbf8   :  { %v763_v40 = vpop.f32.mrb[8].mxu0 }
 0xbf9   :  { %v773_v41 = vadd.f32 %v772_v38, %v763_v40  ;;  %v765_v42 = vpop.f32.mrb[9].mxu0 }
 0xbfa   :  { %v777_v43 = vadd.f32 %v776_v39, %v765_v42  ;;  %v767_v44 = vpop.f32.mrb[10].mxu0 }
 0xbfb   :  { %1393 = vtanh.f32 %v773_v41  ;;  %v768_v45 = vpop.f32.mrb[11].mxu0  ;;  %v1300_v48 = vmul.f32 -1.442695, %v773_v41 }
 0xbfc   :  { %1395 = vtanh.f32 %v777_v43  ;;  %v1301_v49 = vmul.f32 -1.442695, %v777_v43 }
 0xbfd   :  { %1397 = vpow2.f32 %v1300_v48 }
 0xbfe   :  { %1399 = vpow2.f32 %v1301_v49  ;;  %v37_v49 = vld [vmem:[%s1801_s0 + $0xc] sm:$0x1] }
 0xbff   :  { %38 = vst [vmem:[#allocation4 + $0x6] sm:$0x1] %v37_v49 }
 0xc05   :  { %v1394_v46 = vpop.eup %1393 }
 0xc06   :  { %v1396_v47 = vpop.eup %1395  ;;  %794 = vrot.lane.b32.xlu1 %v1394_v46, %s1460_s30 }
 0xc07   :  { %805 = vrot.lane.b32.xlu0 %v1396_v47, %s1460_s30  ;;  %v1398_v50 = vpop.eup %1397 }
 0xc08   :  { %v1400_v51 = vpop.eup %1399  ;;  %v781_v52 = vadd.f32 1.0, %v1398_v50 }
 0xc09   :  { %v788_v53 = vadd.f32 1.0, %v1400_v51 }
 0xc0a   :  { %1401 = vrcp.f32 %v781_v52 }
 0xc0b   :  { %1403 = vrcp.f32 %v788_v53 }
 0xc14   :  { %v1402_v54 = vpop.eup %1401 }
 0xc15   :  { %v1404_v56 = vpop.eup %1403  ;;  %v792_v59 = vmul.f32 %v1402_v54, %v1678_v19 }
 0xc16   :  { %v803_v61 = vmul.f32 %v1404_v56, %v1680_v21 }
 0xc78   :  { %v795_v55 = vpop.permute.xlu1 %794 }
 0xc79   :  { %v797_v57 = vmul.f32 %v1402_v54, %v795_v55  ;;  %v806_v58 = vpop.permute.xlu0 %805 }
 0xc7a   :  { %v808_v0 = vmul.f32 %v1404_v56, %v806_v58 }
 0xc7b   :  { %799 = vrot.lane.b32.xlu1 %v797_v57, %s1460_s30 }
 0xc7c   :  { %810 = vrot.lane.b32.xlu0 %v808_v0, %s1460_s30 }
 0xced   :  { %v800_v60 = vpop.permute.xlu1 %799 }
 0xcee   :  { %v1712_v62 = vadd.f32 %v800_v60, %v792_v59  ;;  %v811_v63 = vpop.permute.xlu0 %810  ;;  %v1272_v59 = vld [vmem:[%s1802_s1 + $0x3] sm:$0x1]  ;;  %v1019_v60 = vld [vmem:[#allocation4 + $0x6] sm:$0x1] }
 0xcef   :  { %v1714_v3 = vadd.f32 %v811_v63, %v803_v61  ;;  %102 = vst [vmem:[#allocation5 + $0x1] sm:$0x1] %v1272_v59 }
 0xcf0   :  { %1405 = vtanh.f32 %v1712_v62 }
 0xcf1   :  { %1407 = vtanh.f32 %v1714_v3 }
 0xcf6   :  { %v1023_v61 = vld [vmem:[#allocation5 + $0x1] sm:$0x1] }
 0xcf7   :  { %v1024_v63 = vunpack.c.l.bf16 %v1023_v61 }
 0xcfa   :  { %v1406_v5 = vpop.eup %1405 }
 0xcfb   :  { %v1408_v8 = vpop.eup %1407  ;;  %816 = vrot.lane.b32.xlu1 %v1406_v5, %s1460_s30 }
 0xcfc   :  { %822 = vrot.lane.b32.xlu0 %v1408_v8, %s1460_s30 }
 0xd6d   :  { %v817_v10 = vpop.permute.xlu1 %816 }
 0xd6e   :  { %v819_v11 = vmul.f32 %v1402_v54, %v817_v10  ;;  %v823_v13 = vpop.permute.xlu0 %822 }
 0xd6f   :  { %v825_v15 = vmul.f32 %v1404_v56, %v823_v13 }
 0xd70   :  { %v833_v18 = vrot.slane %v819_v11, %v1537_v16 }
 0xd71   :  { %v844_v19 = vrot.slane %v825_v15, %v1537_v16 }
 0xd72   :  { %834 = vrot.lane.b32.xlu1 %v833_v18, %s1461_s7 }
 0xd73   :  { %845 = vrot.lane.b32.xlu0 %v844_v19, %s1462_s8 }
 0xde4   :  { %v835_v20 = vpop.permute.xlu1 %834 }
 0xde5   :  { %v846_v21 = vpop.permute.xlu0 %845 }
 0xde6   :  { %v848_v22 = vsel %vm351_vm2, %v835_v20, %v846_v21 }
 0xde7   :  { %v849_v23 = vpack.c.bf16 %v848_v22, %v848_v22 }
 0xde9   :  { %1302 = vmatmul.mubr.msk.bf16.vlgmr.msra.gmra.mrb[8].mxu1 %vm218_vm1, %v849_v23 }
 0xdea   :  { %1102 = vmatpush1.bf16.msra.mxu1 %v1491_v1  ;;  %1133 = vmatprep.mubr.bf16.mxu1 %v1457_v2  ;;  %v895_v1 = vld [vmem:[#allocation4 + $0x5] sm:$0x1] }
 0xdeb   :  { %1103 = vmatprep.subr.bf16.mxu1 %v1499_v4  ;;  %v896_v2 = vunpack.c.l.bf16 %v895_v1 }
 0xdee   :  { %1104 = vmatpush1.bf16.msra.mxu1 %v1508_v6 }
 0xdef   :  { %1105 = vmatprep.subr.bf16.mxu1 %v1515_v7 }
 0xdf2   :  { %1106 = vmatpush1.bf16.msra.mxu1 %v1525_v12 }
 0xdf3   :  { %1107 = vmatprep.subr.bf16.mxu1 %v1532_v14 }
 0xdf6   :  { %1108 = vmatpush1.bf16.msra.mxu1 %v1543_v17 }
 0xebc   :  { %v887_v4 = vpop.f32.mrb[8].mxu1 }
 0xebd   :  { %v897_v27 = vadd.f32 %v896_v2, %v887_v4  ;;  %v889_v6 = vpop.f32.mrb[9].mxu1 }
 0xebe   :  { %v901_v28 = vadd.f32 %v900_v26, %v889_v6  ;;  %v891_v7 = vpop.f32.mrb[10].mxu1 }
 0xebf   :  { %1409 = vtanh.f32 %v897_v27  ;;  %v892_v12 = vpop.f32.mrb[11].mxu1  ;;  %v1303_v17 = vmul.f32 -1.442695, %v897_v27 }
 0xec0   :  { %1411 = vtanh.f32 %v901_v28  ;;  %v1304_v30 = vmul.f32 -1.442695, %v901_v28 }
 0xec1   :  { %1413 = vpow2.f32 %v1303_v17 }
 0xec2   :  { %1415 = vpow2.f32 %v1304_v30  ;;  %v39_v30 = vld [vmem:[%s1801_s0 + $0xe] sm:$0x1] }
 0xec3   :  { %40 = vst [vmem:[#allocation4 + $0x7] sm:$0x1] %v39_v30 }
 0xec9   :  { %v1410_v14 = vpop.eup %1409 }
 0xeca   :  { %v1412_v29 = vpop.eup %1411  ;;  %918 = vrot.lane.b32.xlu1 %v1410_v14, %s1460_s30 }
 0xecb   :  { %929 = vrot.lane.b32.xlu0 %v1412_v29, %s1460_s30  ;;  %v1414_v31 = vpop.eup %1413 }
 0xecc   :  { %v1416_v32 = vpop.eup %1415  ;;  %v905_v33 = vadd.f32 1.0, %v1414_v31 }
 0xecd   :  { %v912_v34 = vadd.f32 1.0, %v1416_v32 }
 0xece   :  { %1417 = vrcp.f32 %v905_v33 }
 0xecf   :  { %1419 = vrcp.f32 %v912_v34 }
 0xed8   :  { %v1418_v35 = vpop.eup %1417 }
 0xed9   :  { %v1420_v37 = vpop.eup %1419  ;;  %v916_v41 = vmul.f32 %v1418_v35, %v1712_v62  ;;  %v1020_v62 = vunpack.c.l.bf16 %v1019_v60 }
 0xeda   :  { %v927_v43 = vmul.f32 %v1420_v37, %v1714_v3 }
 0xf3c   :  { %v919_v36 = vpop.permute.xlu1 %918 }
 0xf3d   :  { %v921_v38 = vmul.f32 %v1418_v35, %v919_v36  ;;  %v930_v39 = vpop.permute.xlu0 %929 }
 0xf3e   :  { %v932_v40 = vmul.f32 %v1420_v37, %v930_v39 }
 0xf3f   :  { %923 = vrot.lane.b32.xlu1 %v921_v38, %s1460_s30 }
 0xf40   :  { %934 = vrot.lane.b32.xlu0 %v932_v40, %s1460_s30 }
 0xfb1   :  { %v924_v42 = vpop.permute.xlu1 %923 }
 0xfb2   :  { %v926_v44 = vadd.f32 %v924_v42, %v916_v41  ;;  %v935_v45 = vpop.permute.xlu0 %934  ;;  %v1271_v41 = vld [vmem:[%s1802_s1 + $0x1] sm:$0x1]  ;;  %v1143_v42 = vld [vmem:[#allocation4 + $0x7] sm:$0x1] }
 0xfb3   :  { %v937_v46 = vadd.f32 %v935_v45, %v927_v43  ;;  %100 = vst [vmem:[#allocation5] sm:$0x1] %v1271_v41 }
 0xfb4   :  { %1421 = vtanh.f32 %v926_v44 }
 0xfb5   :  { %1423 = vtanh.f32 %v937_v46 }
 0xfba   :  { %v1146_v43 = vld [vmem:[#allocation5] sm:$0x1] }
 0xfbb   :  { %v1147_v45 = vunpack.c.l.bf16 %v1146_v43 }
 0xfbe   :  { %v1422_v47 = vpop.eup %1421 }
 0xfbf   :  { %v1424_v48 = vpop.eup %1423  ;;  %940 = vrot.lane.b32.xlu1 %v1422_v47, %s1460_s30 }
 0xfc0   :  { %946 = vrot.lane.b32.xlu0 %v1424_v48, %s1460_s30 }
0x1031   :  { %v941_v50 = vpop.permute.xlu1 %940 }
0x1032   :  { %v943_v51 = vmul.f32 %v1418_v35, %v941_v50  ;;  %v947_v52 = vpop.permute.xlu0 %946 }
0x1033   :  { %v949_v53 = vmul.f32 %v1420_v37, %v947_v52 }
0x1034   :  { %v957_v54 = vrot.slane %v943_v51, %v1537_v16 }
0x1035   :  { %v968_v55 = vrot.slane %v949_v53, %v1537_v16 }
0x1036   :  { %958 = vrot.lane.b32.xlu1 %v957_v54, %s1461_s7 }
0x1037   :  { %969 = vrot.lane.b32.xlu0 %v968_v55, %s1462_s8 }
0x10a8   :  { %v959_v56 = vpop.permute.xlu1 %958 }
0x10a9   :  { %v970_v57 = vpop.permute.xlu0 %969 }
0x10aa   :  { %v972_v58 = vsel %vm351_vm2, %v959_v56, %v970_v57 }
0x10ab   :  { %v973_v0 = vpack.c.bf16 %v972_v58, %v972_v58 }
0x10ad   :  { %1305 = vmatmul.mubr.msk.bf16.vlgmr.msra.gmra.mrb[12].mxu0 %vm218_vm1, %v973_v0 }
0x1180   :  { %v1011_v3 = vpop.f32.mrb[12].mxu0 }
0x1181   :  { %v1021_v5 = vadd.f32 %v1020_v62, %v1011_v3  ;;  %v1013_v8 = vpop.f32.mrb[13].mxu0 }
0x1182   :  { %v1025_v9 = vadd.f32 %v1024_v63, %v1013_v8  ;;  %v1015_v10 = vpop.f32.mrb[14].mxu0 }
0x1183   :  { %1425 = vtanh.f32 %v1021_v5  ;;  %v1016_v11 = vpop.f32.mrb[15].mxu0  ;;  %v1306_v18 = vmul.f32 -1.442695, %v1021_v5 }
0x1184   :  { %1427 = vtanh.f32 %v1025_v9  ;;  %v1307_v19 = vmul.f32 -1.442695, %v1025_v9 }
0x1185   :  { %1429 = vpow2.f32 %v1306_v18 }
0x1186   :  { %1431 = vpow2.f32 %v1307_v19 }
0x118d   :  { %v1426_v13 = vpop.eup %1425 }
0x118e   :  { %v1428_v15 = vpop.eup %1427  ;;  %1042 = vrot.lane.b32.xlu1 %v1426_v13, %s1460_s30 }
0x118f   :  { %1053 = vrot.lane.b32.xlu0 %v1428_v15, %s1460_s30  ;;  %v1430_v20 = vpop.eup %1429 }
0x1190   :  { %v1432_v21 = vpop.eup %1431  ;;  %v1029_v22 = vadd.f32 1.0, %v1430_v20 }
0x1191   :  { %v1036_v23 = vadd.f32 1.0, %v1432_v21 }
0x1192   :  { %1433 = vrcp.f32 %v1029_v22 }
0x1193   :  { %1435 = vrcp.f32 %v1036_v23 }
0x119c   :  { %v1434_v24 = vpop.eup %1433 }
0x119d   :  { %v1436_v25 = vpop.eup %1435  ;;  %v1040_v27 = vmul.f32 %v1434_v24, %v926_v44  ;;  %v1144_v44 = vunpack.c.l.bf16 %v1143_v42 }
0x119e   :  { %v1051_v28 = vmul.f32 %v1436_v25, %v937_v46 }
0x1200   :  { %v1043_v1 = vpop.permute.xlu1 %1042 }
0x1201   :  { %v1045_v2 = vmul.f32 %v1434_v24, %v1043_v1  ;;  %v1054_v26 = vpop.permute.xlu0 %1053 }
0x1202   :  { %v1056_v4 = vmul.f32 %v1436_v25, %v1054_v26 }
0x1203   :  { %1047 = vrot.lane.b32.xlu1 %v1045_v2, %s1460_s30 }
0x1204   :  { %1058 = vrot.lane.b32.xlu0 %v1056_v4, %s1460_s30 }
0x1275   :  { %v1048_v6 = vpop.permute.xlu1 %1047 }
0x1276   :  { %v1050_v7 = vadd.f32 %v1048_v6, %v1040_v27  ;;  %v1059_v12 = vpop.permute.xlu0 %1058 }
0x1277   :  { %v1061_v14 = vadd.f32 %v1059_v12, %v1051_v28 }
0x1278   :  { %1437 = vtanh.f32 %v1050_v7 }
0x1279   :  { %1439 = vtanh.f32 %v1061_v14 }
0x1282   :  { %v1438_v29 = vpop.eup %1437 }
0x1283   :  { %v1440_v17 = vpop.eup %1439  ;;  %1064 = vrot.lane.b32.xlu1 %v1438_v29, %s1460_s30 }
0x1284   :  { %1070 = vrot.lane.b32.xlu0 %v1440_v17, %s1460_s30 }
0x12f5   :  { %v1065_v31 = vpop.permute.xlu1 %1064 }
0x12f6   :  { %v1067_v32 = vmul.f32 %v1434_v24, %v1065_v31  ;;  %v1071_v33 = vpop.permute.xlu0 %1070 }
0x12f7   :  { %v1073_v34 = vmul.f32 %v1436_v25, %v1071_v33 }
0x12f8   :  { %v1081_v35 = vrot.slane %v1067_v32, %v1537_v16 }
0x12f9   :  { %v1092_v36 = vrot.slane %v1073_v34, %v1537_v16 }
0x12fa   :  { %1082 = vrot.lane.b32.xlu1 %v1081_v35, %s1461_s7 }
0x12fb   :  { %1093 = vrot.lane.b32.xlu0 %v1092_v36, %s1462_s8 }
0x136c   :  { %v1083_v37 = vpop.permute.xlu1 %1082 }
0x136d   :  { %v1094_v38 = vpop.permute.xlu0 %1093 }
0x136e   :  { %v1096_v39 = vsel %vm351_vm2, %v1083_v37, %v1094_v38 }
0x136f   :  { %v1097_v40 = vpack.c.bf16 %v1096_v39, %v1096_v39 }
0x1371   :  { %1308 = vmatmul.mubr.msk.bf16.vlgmr.msra.gmra.mrb[12].mxu1 %vm218_vm1, %v1097_v40 }
0x1444   :  { %v1135_v46 = vpop.f32.mrb[12].mxu1 }
0x1445   :  { %v1145_v47 = vadd.f32 %v1144_v44, %v1135_v46  ;;  %v1137_v48 = vpop.f32.mrb[13].mxu1 }
0x1446   :  { %v1148_v49 = vadd.f32 %v1147_v45, %v1137_v48  ;;  %v1139_v50 = vpop.f32.mrb[14].mxu1 }
0x1447   :  { %1441 = vtanh.f32 %v1145_v47  ;;  %v1140_v51 = vpop.f32.mrb[15].mxu1  ;;  %v1309_v54 = vmul.f32 -1.442695, %v1145_v47 }
0x1448   :  { %1443 = vtanh.f32 %v1148_v49  ;;  %v1310_v55 = vmul.f32 -1.442695, %v1148_v49 }
0x1449   :  { %1445 = vpow2.f32 %v1309_v54 }
0x144a   :  { %1447 = vpow2.f32 %v1310_v55 }
0x1451   :  { %v1442_v52 = vpop.eup %1441 }
0x1452   :  { %v1444_v53 = vpop.eup %1443  ;;  %1165 = vrot.lane.b32.xlu1 %v1442_v52, %s1460_s30 }
0x1453   :  { %1176 = vrot.lane.b32.xlu0 %v1444_v53, %s1460_s30  ;;  %v1446_v56 = vpop.eup %1445 }
0x1454   :  { %v1448_v57 = vpop.eup %1447  ;;  %v1152_v58 = vadd.f32 1.0, %v1446_v56 }
0x1455   :  { %v1159_v0 = vadd.f32 1.0, %v1448_v57 }
0x1456   :  { %1449 = vrcp.f32 %v1152_v58 }
0x1457   :  { %1451 = vrcp.f32 %v1159_v0 }
0x1460   :  { %v1450_v59 = vpop.eup %1449 }
0x1461   :  { %v1452_v61 = vpop.eup %1451  ;;  %v1163_v5 = vmul.f32 %v1450_v59, %v1050_v7 }
0x1462   :  { %v1174_v9 = vmul.f32 %v1452_v61, %v1061_v14 }
0x14c4   :  { %v1166_v60 = vpop.permute.xlu1 %1165 }
0x14c5   :  { %v1168_v62 = vmul.f32 %v1450_v59, %v1166_v60  ;;  %v1177_v63 = vpop.permute.xlu0 %1176 }
0x14c6   :  { %v1179_v3 = vmul.f32 %v1452_v61, %v1177_v63 }
0x14c7   :  { %1170 = vrot.lane.b32.xlu1 %v1168_v62, %s1460_s30 }
0x14c8   :  { %1181 = vrot.lane.b32.xlu0 %v1179_v3, %s1460_s30 }
0x1539   :  { %v1171_v8 = vpop.permute.xlu1 %1170 }
0x153a   :  { %v1173_v10 = vadd.f32 %v1171_v8, %v1163_v5  ;;  %v1182_v11 = vpop.permute.xlu0 %1181 }
0x153b   :  { %v1184_v13 = vadd.f32 %v1182_v11, %v1174_v9 }
0x153c   :  { %1453 = vtanh.f32 %v1173_v10  ;;  %v1229_v19 = vrot.slane %v1173_v10, %v1537_v16 }
0x153d   :  { %1455 = vtanh.f32 %v1184_v13  ;;  %v1248_v25 = vrot.slane %v1184_v13, %v1537_v16 }
0x1546   :  { %v1454_v15 = vpop.eup %1453 }
0x1547   :  { %v1456_v18 = vpop.eup %1455  ;;  %1187 = vrot.lane.b32.xlu1 %v1454_v15, %s1460_s30 }
0x1548   :  { %1193 = vrot.lane.b32.xlu0 %v1456_v18, %s1460_s30 }
0x154b   :  { %1238 = vrot.lane.b32.xlu1 %v1229_v19, %s1460_s30 }
0x15b9   :  { %v1188_v20 = vpop.permute.xlu1 %1187 }
0x15ba   :  { %v1190_v21 = vmul.f32 %v1450_v59, %v1188_v20  ;;  %v1194_v22 = vpop.permute.xlu0 %1193 }
0x15bb   :  { %v1196_v23 = vmul.f32 %v1452_v61, %v1194_v22 }
0x15bc   :  { %v1204_v24 = vrot.slane %v1190_v21, %v1537_v16 }
0x15bd   :  { %v1215_v1 = vrot.slane %v1196_v23, %v1537_v16  ;;  %v1239_v2 = vpop.permute.xlu1 %1238 }
0x15be   :  { %1205 = vrot.lane.b32.xlu1 %v1204_v24, %s1461_s7 }
0x15bf   :  { %1216 = vrot.lane.b32.xlu0 %v1215_v1, %s1462_s8 }
0x15c2   :  { %1249 = vrot.lane.b32.xlu1 %v1248_v25, %s1461_s7 }
0x15c3   :  { %1230 = vrot.lane.b32.xlu0 %v1229_v19, %s1462_s8 }
0x1630   :  { %v1206_v26 = vpop.permute.xlu1 %1205 }
0x1631   :  { %v1217_v4 = vpop.permute.xlu0 %1216 }
0x1632   :  { %v1219_v27 = vsel %vm351_vm2, %v1206_v26, %v1217_v4 }
0x1633   :  { %1221 = vst.msk [vmem:[#allocation2] sm:$0x3] %vm164_vm0, %v1219_v27  ;;  %v1252_v6 = vsel %vm218_vm1, %v1219_v27, %v1239_v2 }
0x1634   :  { %v1250_v28 = vpop.permute.xlu1 %1249 }
0x1635   :  { %v1254_v7 = vsel %vm1253_vm3, %v1252_v6, %v1250_v28  ;;  %v1231_v12 = vpop.permute.xlu0 %1230 }
0x1636   :  { %1255 = vst [vmem:[%s1804_s3] sm:$0x3] %v1254_v7  ;;  %v1233_v16 = vsel %vm351_vm2, %v1231_v12, %v1184_v13 }
0x1637   :  { %1234 = vst.msk [vmem:[#allocation3] sm:$0x3] %vm164_vm0, %v1233_v16 }

</bundles_post_ra>
